<compile_context>
chip_gen: v7x
topology: tpu7x:2x2x1
jax: 0.10.0
libtpu: 0.0.40
codegen_flags: <defaults>
</compile_context>

<pallas_src>
import functools

import numpy as np
import jax
import jax.numpy as jnp
from jax.experimental import pallas as pl
from jax.experimental.pallas import tpu as pltpu


def _round_up(x, m):
    return (x + m - 1) // m * m


def _fused_relation_ctx_kernel(ents_ref, w_top_ref, w_bot_ref, b_rel_ref,
                               w_fc1_ref, b_fc1_ref, o_ref, *, pairs, b_pad):
    """Fused: per-entity projections -> pairwise ReLU features -> single fc1 matmul -> ReLU.

    ents_ref : (num_ent * b_pad, DK)   entity-major rows (row = e*b_pad + b), zero-padded
    w_top_ref: (DK, NH)                W_rel[:dim_ent], zero-padded
    w_bot_ref: (DK, NH)                W_rel[dim_ent:], zero-padded
    b_rel_ref: (1, NH)
    w_fc1_ref: (num_rel * NH, NE)      W_fc1 re-blocked per relation, zero-padded
    b_fc1_ref: (1, NE)
    o_ref    : (b_pad, NE)
    """
    ents = ents_ref[...]
    # One projection per entity instead of one per (entity, pair): ~3x fewer layer-1 FLOPs.
    p = jnp.dot(ents, w_top_ref[...], preferred_element_type=jnp.float32)
    q = jnp.dot(ents, w_bot_ref[...], preferred_element_type=jnp.float32)
    b_rel = b_rel_ref[...]

    # Static (trace-time) unrolled loop over the i<j pairs.  Each block is a lane-dense
    # (b_pad, NH) tile; static sublane slices at multiples of 8 are free vreg selects.
    h_blocks = []
    for (i, j) in pairs:
        h_blocks.append(jnp.maximum(
            p[i * b_pad:(i + 1) * b_pad, :]
            + q[j * b_pad:(j + 1) * b_pad, :]
            + b_rel,
            0.0))
    # Lane-concat of full 128-lane tiles: pure vreg placement, no XLU shifts, no VMEM scratch.
    h = jnp.concatenate(h_blocks, axis=1)          # (b_pad, num_rel * NH)

    # Single fc1 matmul; accumulation over the num_rel*NH contraction stays inside the MXU.
    out = jnp.dot(h, w_fc1_ref[...], preferred_element_type=jnp.float32)
    o_ref[...] = jnp.maximum(out + b_fc1_ref[...], 0.0)


@functools.partial(jax.jit, static_argnames=("num_ent", "dim_ent"))
def relation_context_encoder_forward(ctx, params, num_ent, dim_ent):
    """ReLU(fc1(ReLU(relation_encoder(pairs(ctx))))); dropout = identity (eval)."""
    f32 = jnp.float32
    B = ctx.shape[0]
    nhid_rel = params["w_rel"].shape[1]
    nembed_ctx = params["w_fc1"].shape[1]

    # Pair index set: i outer, j inner, i < j — same ordering as the PyTorch loop.
    ii, jj = np.triu_indices(num_ent, k=1)
    num_rel = int(ii.shape[0])
    pairs = tuple(zip(ii.tolist(), jj.tolist()))

    # Sublane/lane-dense padded sizes.
    B_pad = _round_up(max(B, 8), 8)        # 8-aligned batch rows
    DK = _round_up(dim_ent, 8)             # layer-1 contraction dim
    NH = _round_up(nhid_rel, 128)          # lane-dense hidden width
    NE = _round_up(nembed_ctx, 128)        # lane-dense output width

    # Entity-major layout: row e*B_pad + b holds entity e of batch element b, so each
    # entity's batch rows form a contiguous, sublane-aligned (B_pad, DK) block.
    ents = ctx.reshape(B, num_ent, dim_ent).astype(f32)
    ents = jnp.transpose(ents, (1, 0, 2))
    ents = jnp.pad(ents, ((0, 0), (0, B_pad - B), (0, DK - dim_ent)))
    ents2d = ents.reshape(num_ent * B_pad, DK)

    # cat(e_i, e_j) @ W_rel == e_i @ W_rel[:dim_ent] + e_j @ W_rel[dim_ent:]
    w_rel = params["w_rel"].astype(f32)
    w_top = jnp.pad(w_rel[:dim_ent], ((0, DK - dim_ent), (0, NH - nhid_rel)))
    w_bot = jnp.pad(w_rel[dim_ent:], ((0, DK - dim_ent), (0, NH - nhid_rel)))
    b_rel = jnp.pad(params["b_rel"].astype(f32).reshape(1, nhid_rel),
                    ((0, 0), (0, NH - nhid_rel)))

    # fc1 weight re-blocked per relation so it lines up with the lane-concatenated H.
    # Zero padding keeps the math exact: padded h lanes are relu(0+0+0)=0 and padded
    # W rows/cols are 0.
    w_fc1 = params["w_fc1"].astype(f32).reshape(num_rel, nhid_rel, nembed_ctx)
    w_fc1 = jnp.pad(w_fc1, ((0, 0), (0, NH - nhid_rel), (0, NE - nembed_ctx)))
    w_fc1 = w_fc1.reshape(num_rel * NH, NE)
    b_fc1 = jnp.pad(params["b_fc1"].astype(f32).reshape(1, nembed_ctx),
                    ((0, 0), (0, NE - nembed_ctx)))

    kernel = functools.partial(_fused_relation_ctx_kernel, pairs=pairs, b_pad=B_pad)

    flops = (2 * 2 * (num_ent * B_pad) * DK * NH            # two per-entity projections
             + 2 * B_pad * (num_rel * NH) * NE)              # fc1
    bytes_accessed = 4 * int(ents2d.size + w_top.size + w_bot.size + b_rel.size
                             + w_fc1.size + b_fc1.size + B_pad * NE)

    out_pad = pl.pallas_call(
        kernel,
        out_shape=jax.ShapeDtypeStruct((B_pad, NE), f32),
        # No grid: single invocation with every operand fully resident in VMEM
        # (~1.5 MiB total), so there is no pointless grid=(1,) double-buffering.
        in_specs=[pl.BlockSpec(memory_space=pltpu.MemorySpace.VMEM)] * 6,
        out_specs=pl.BlockSpec(memory_space=pltpu.MemorySpace.VMEM),
        cost_estimate=pl.CostEstimate(flops=flops, transcendentals=0,
                                      bytes_accessed=bytes_accessed),
    )(ents2d, w_top, w_bot, b_rel, w_fc1, b_fc1)

    # Strip padding back to the module's output shape.
    return out_pad[:B, :nembed_ctx]


def _torch_linear_init(key, fan_in, fan_out):
    """Deterministic stand-in for torch.nn.Linear default init: U(-1/sqrt(fan_in), +)."""
    kw, kb = jax.random.split(key)
    bound = 1.0 / np.sqrt(fan_in)
    w = jax.random.uniform(kw, (fan_in, fan_out), jnp.float32, -bound, bound)
    b = jax.random.uniform(kb, (fan_out,), jnp.float32, -bound, bound)
    return w, b


def _reference_forward(ctx, params, num_ent, dim_ent):
    B = ctx.shape[0]
    ents = ctx.reshape(B, num_ent, dim_ent)
    ii, jj = np.triu_indices(num_ent, k=1)
    rel_pairs = jnp.concatenate([ents[:, ii, :], ents[:, jj, :]], axis=-1)
    h = jnp.maximum(
        jnp.einsum("brd,dh->brh", rel_pairs, params["w_rel"],
                   precision=jax.lax.Precision.HIGHEST) + params["b_rel"], 0.0)
    h = h.reshape(B, -1)
    out = jnp.maximum(
        jnp.dot(h, params["w_fc1"], precision=jax.lax.Precision.HIGHEST)
        + params["b_fc1"], 0.0)
    return out


if __name__ == "__main__":
    # Small shapes consistent with the module (OneCommon-style domain).
    num_ent, dim_ent = 7, 4          # domain.num_ent(), domain.dim_ent()
    nhid_rel, nembed_ctx = 32, 64    # args.nhid_rel, args.nembed_ctx
    batch = 2
    num_rel = num_ent * (num_ent - 1) // 2

    key = jax.random.PRNGKey(0)
    k_ctx, k_rel, k_fc1 = jax.random.split(key, 3)

    ctx = jax.random.normal(k_ctx, (batch, num_ent * dim_ent), jnp.float32)

    w_rel, b_rel = _torch_linear_init(k_rel, 2 * dim_ent, nhid_rel)
    w_fc1, b_fc1 = _torch_linear_init(k_fc1, num_rel * nhid_rel, nembed_ctx)
    params = {"w_rel": w_rel, "b_rel": b_rel, "w_fc1": w_fc1, "b_fc1": b_fc1}

    out = relation_context_encoder_forward(ctx, params, num_ent, dim_ent)
    out = jax.block_until_ready(out)
    assert out.shape == (batch, nembed_ctx)

    ref = jax.block_until_ready(_reference_forward(ctx, params, num_ent, dim_ent))
    np.testing.assert_allclose(np.asarray(out), np.asarray(ref), rtol=1e-5, atol=1e-5)

    print("KERNEL_OK")
</pallas_src>

<mosaic_0001>
module attributes {stable_mosaic.version = 11 : i64} {
  func.func @_fused_relation_ctx_kernel(%arg0: memref<56x8xf32, #tpu.memory_space<vmem>>, %arg1: memref<8x128xf32, #tpu.memory_space<vmem>>, %arg2: memref<8x128xf32, #tpu.memory_space<vmem>>, %arg3: memref<1x128xf32, #tpu.memory_space<vmem>>, %arg4: memref<2688x128xf32, #tpu.memory_space<vmem>>, %arg5: memref<1x128xf32, #tpu.memory_space<vmem>>, %arg6: memref<8x128xf32, #tpu.memory_space<vmem>>) attributes {dimension_semantics = [], scalar_prefetch = 0 : i64, scratch_operands = 0 : i64, tpu.core_type = #tpu.core_type<tc>} {
    %c0 = arith.constant 0 : index
    %c0_0 = arith.constant 0 : index
    %0 = vector.load %arg0[%c0, %c0_0] : memref<56x8xf32, #tpu.memory_space<vmem>>, vector<56x8xf32>
    %c0_1 = arith.constant 0 : index
    %c0_2 = arith.constant 0 : index
    %1 = vector.load %arg1[%c0_1, %c0_2] : memref<8x128xf32, #tpu.memory_space<vmem>>, vector<8x128xf32>
    %cst = arith.constant dense<0.000000e+00> : vector<56x128xf32>
    %2 = tpu.matmul %0, %1, %cst {dimension_numbers = #tpu.dot_dimension_numbers<[1], [0], [0], [1], [0, 0, 1, 1], [], []>} : vector<56x8xf32>, vector<8x128xf32>, vector<56x128xf32> -> vector<56x128xf32>
    %c0_3 = arith.constant 0 : index
    %c0_4 = arith.constant 0 : index
    %3 = vector.load %arg2[%c0_3, %c0_4] : memref<8x128xf32, #tpu.memory_space<vmem>>, vector<8x128xf32>
    %cst_5 = arith.constant dense<0.000000e+00> : vector<56x128xf32>
    %4 = tpu.matmul %0, %3, %cst_5 {dimension_numbers = #tpu.dot_dimension_numbers<[1], [0], [0], [1], [0, 0, 1, 1], [], []>} : vector<56x8xf32>, vector<8x128xf32>, vector<56x128xf32> -> vector<56x128xf32>
    %c0_6 = arith.constant 0 : index
    %c0_7 = arith.constant 0 : index
    %5 = vector.load %arg3[%c0_6, %c0_7] : memref<1x128xf32, #tpu.memory_space<vmem>>, vector<1x128xf32>
    %6 = vector.extract_strided_slice %2 {offsets = [0, 0], sizes = [8, 128], strides = [1, 1]} : vector<56x128xf32> to vector<8x128xf32>
    %7 = vector.extract_strided_slice %4 {offsets = [8, 0], sizes = [8, 128], strides = [1, 1]} : vector<56x128xf32> to vector<8x128xf32>
    %8 = arith.addf %6, %7 : vector<8x128xf32>
    %9 = vector.broadcast %5 : vector<1x128xf32> to vector<8x128xf32>
    %10 = arith.addf %8, %9 : vector<8x128xf32>
    %cst_8 = arith.constant 0.000000e+00 : f32
    %11 = vector.broadcast %cst_8 : f32 to vector<8x128xf32>
    %12 = arith.maximumf %10, %11 : vector<8x128xf32>
    %13 = vector.extract_strided_slice %2 {offsets = [0, 0], sizes = [8, 128], strides = [1, 1]} : vector<56x128xf32> to vector<8x128xf32>
    %14 = vector.extract_strided_slice %4 {offsets = [16, 0], sizes = [8, 128], strides = [1, 1]} : vector<56x128xf32> to vector<8x128xf32>
    %15 = arith.addf %13, %14 : vector<8x128xf32>
    %16 = vector.broadcast %5 : vector<1x128xf32> to vector<8x128xf32>
    %17 = arith.addf %15, %16 : vector<8x128xf32>
    %cst_9 = arith.constant 0.000000e+00 : f32
    %18 = vector.broadcast %cst_9 : f32 to vector<8x128xf32>
    %19 = arith.maximumf %17, %18 : vector<8x128xf32>
    %20 = vector.extract_strided_slice %2 {offsets = [0, 0], sizes = [8, 128], strides = [1, 1]} : vector<56x128xf32> to vector<8x128xf32>
    %21 = vector.extract_strided_slice %4 {offsets = [24, 0], sizes = [8, 128], strides = [1, 1]} : vector<56x128xf32> to vector<8x128xf32>
    %22 = arith.addf %20, %21 : vector<8x128xf32>
    %23 = vector.broadcast %5 : vector<1x128xf32> to vector<8x128xf32>
    %24 = arith.addf %22, %23 : vector<8x128xf32>
    %cst_10 = arith.constant 0.000000e+00 : f32
    %25 = vector.broadcast %cst_10 : f32 to vector<8x128xf32>
    %26 = arith.maximumf %24, %25 : vector<8x128xf32>
    %27 = vector.extract_strided_slice %2 {offsets = [0, 0], sizes = [8, 128], strides = [1, 1]} : vector<56x128xf32> to vector<8x128xf32>
    %28 = vector.extract_strided_slice %4 {offsets = [32, 0], sizes = [8, 128], strides = [1, 1]} : vector<56x128xf32> to vector<8x128xf32>
    %29 = arith.addf %27, %28 : vector<8x128xf32>
    %30 = vector.broadcast %5 : vector<1x128xf32> to vector<8x128xf32>
    %31 = arith.addf %29, %30 : vector<8x128xf32>
    %cst_11 = arith.constant 0.000000e+00 : f32
    %32 = vector.broadcast %cst_11 : f32 to vector<8x128xf32>
    %33 = arith.maximumf %31, %32 : vector<8x128xf32>
    %34 = vector.extract_strided_slice %2 {offsets = [0, 0], sizes = [8, 128], strides = [1, 1]} : vector<56x128xf32> to vector<8x128xf32>
    %35 = vector.extract_strided_slice %4 {offsets = [40, 0], sizes = [8, 128], strides = [1, 1]} : vector<56x128xf32> to vector<8x128xf32>
    %36 = arith.addf %34, %35 : vector<8x128xf32>
    %37 = vector.broadcast %5 : vector<1x128xf32> to vector<8x128xf32>
    %38 = arith.addf %36, %37 : vector<8x128xf32>
    %cst_12 = arith.constant 0.000000e+00 : f32
    %39 = vector.broadcast %cst_12 : f32 to vector<8x128xf32>
    %40 = arith.maximumf %38, %39 : vector<8x128xf32>
    %41 = vector.extract_strided_slice %2 {offsets = [0, 0], sizes = [8, 128], strides = [1, 1]} : vector<56x128xf32> to vector<8x128xf32>
    %42 = vector.extract_strided_slice %4 {offsets = [48, 0], sizes = [8, 128], strides = [1, 1]} : vector<56x128xf32> to vector<8x128xf32>
    %43 = arith.addf %41, %42 : vector<8x128xf32>
    %44 = vector.broadcast %5 : vector<1x128xf32> to vector<8x128xf32>
    %45 = arith.addf %43, %44 : vector<8x128xf32>
    %cst_13 = arith.constant 0.000000e+00 : f32
    %46 = vector.broadcast %cst_13 : f32 to vector<8x128xf32>
    %47 = arith.maximumf %45, %46 : vector<8x128xf32>
    %48 = vector.extract_strided_slice %2 {offsets = [8, 0], sizes = [8, 128], strides = [1, 1]} : vector<56x128xf32> to vector<8x128xf32>
    %49 = vector.extract_strided_slice %4 {offsets = [16, 0], sizes = [8, 128], strides = [1, 1]} : vector<56x128xf32> to vector<8x128xf32>
    %50 = arith.addf %48, %49 : vector<8x128xf32>
    %51 = vector.broadcast %5 : vector<1x128xf32> to vector<8x128xf32>
    %52 = arith.addf %50, %51 : vector<8x128xf32>
    %cst_14 = arith.constant 0.000000e+00 : f32
    %53 = vector.broadcast %cst_14 : f32 to vector<8x128xf32>
    %54 = arith.maximumf %52, %53 : vector<8x128xf32>
    %55 = vector.extract_strided_slice %2 {offsets = [8, 0], sizes = [8, 128], strides = [1, 1]} : vector<56x128xf32> to vector<8x128xf32>
    %56 = vector.extract_strided_slice %4 {offsets = [24, 0], sizes = [8, 128], strides = [1, 1]} : vector<56x128xf32> to vector<8x128xf32>
    %57 = arith.addf %55, %56 : vector<8x128xf32>
    %58 = vector.broadcast %5 : vector<1x128xf32> to vector<8x128xf32>
    %59 = arith.addf %57, %58 : vector<8x128xf32>
    %cst_15 = arith.constant 0.000000e+00 : f32
    %60 = vector.broadcast %cst_15 : f32 to vector<8x128xf32>
    %61 = arith.maximumf %59, %60 : vector<8x128xf32>
    %62 = vector.extract_strided_slice %2 {offsets = [8, 0], sizes = [8, 128], strides = [1, 1]} : vector<56x128xf32> to vector<8x128xf32>
    %63 = vector.extract_strided_slice %4 {offsets = [32, 0], sizes = [8, 128], strides = [1, 1]} : vector<56x128xf32> to vector<8x128xf32>
    %64 = arith.addf %62, %63 : vector<8x128xf32>
    %65 = vector.broadcast %5 : vector<1x128xf32> to vector<8x128xf32>
    %66 = arith.addf %64, %65 : vector<8x128xf32>
    %cst_16 = arith.constant 0.000000e+00 : f32
    %67 = vector.broadcast %cst_16 : f32 to vector<8x128xf32>
    %68 = arith.maximumf %66, %67 : vector<8x128xf32>
    %69 = vector.extract_strided_slice %2 {offsets = [8, 0], sizes = [8, 128], strides = [1, 1]} : vector<56x128xf32> to vector<8x128xf32>
    %70 = vector.extract_strided_slice %4 {offsets = [40, 0], sizes = [8, 128], strides = [1, 1]} : vector<56x128xf32> to vector<8x128xf32>
    %71 = arith.addf %69, %70 : vector<8x128xf32>
    %72 = vector.broadcast %5 : vector<1x128xf32> to vector<8x128xf32>
    %73 = arith.addf %71, %72 : vector<8x128xf32>
    %cst_17 = arith.constant 0.000000e+00 : f32
    %74 = vector.broadcast %cst_17 : f32 to vector<8x128xf32>
    %75 = arith.maximumf %73, %74 : vector<8x128xf32>
    %76 = vector.extract_strided_slice %2 {offsets = [8, 0], sizes = [8, 128], strides = [1, 1]} : vector<56x128xf32> to vector<8x128xf32>
    %77 = vector.extract_strided_slice %4 {offsets = [48, 0], sizes = [8, 128], strides = [1, 1]} : vector<56x128xf32> to vector<8x128xf32>
    %78 = arith.addf %76, %77 : vector<8x128xf32>
    %79 = vector.broadcast %5 : vector<1x128xf32> to vector<8x128xf32>
    %80 = arith.addf %78, %79 : vector<8x128xf32>
    %cst_18 = arith.constant 0.000000e+00 : f32
    %81 = vector.broadcast %cst_18 : f32 to vector<8x128xf32>
    %82 = arith.maximumf %80, %81 : vector<8x128xf32>
    %83 = vector.extract_strided_slice %2 {offsets = [16, 0], sizes = [8, 128], strides = [1, 1]} : vector<56x128xf32> to vector<8x128xf32>
    %84 = vector.extract_strided_slice %4 {offsets = [24, 0], sizes = [8, 128], strides = [1, 1]} : vector<56x128xf32> to vector<8x128xf32>
    %85 = arith.addf %83, %84 : vector<8x128xf32>
    %86 = vector.broadcast %5 : vector<1x128xf32> to vector<8x128xf32>
    %87 = arith.addf %85, %86 : vector<8x128xf32>
    %cst_19 = arith.constant 0.000000e+00 : f32
    %88 = vector.broadcast %cst_19 : f32 to vector<8x128xf32>
    %89 = arith.maximumf %87, %88 : vector<8x128xf32>
    %90 = vector.extract_strided_slice %2 {offsets = [16, 0], sizes = [8, 128], strides = [1, 1]} : vector<56x128xf32> to vector<8x128xf32>
    %91 = vector.extract_strided_slice %4 {offsets = [32, 0], sizes = [8, 128], strides = [1, 1]} : vector<56x128xf32> to vector<8x128xf32>
    %92 = arith.addf %90, %91 : vector<8x128xf32>
    %93 = vector.broadcast %5 : vector<1x128xf32> to vector<8x128xf32>
    %94 = arith.addf %92, %93 : vector<8x128xf32>
    %cst_20 = arith.constant 0.000000e+00 : f32
    %95 = vector.broadcast %cst_20 : f32 to vector<8x128xf32>
    %96 = arith.maximumf %94, %95 : vector<8x128xf32>
    %97 = vector.extract_strided_slice %2 {offsets = [16, 0], sizes = [8, 128], strides = [1, 1]} : vector<56x128xf32> to vector<8x128xf32>
    %98 = vector.extract_strided_slice %4 {offsets = [40, 0], sizes = [8, 128], strides = [1, 1]} : vector<56x128xf32> to vector<8x128xf32>
    %99 = arith.addf %97, %98 : vector<8x128xf32>
    %100 = vector.broadcast %5 : vector<1x128xf32> to vector<8x128xf32>
    %101 = arith.addf %99, %100 : vector<8x128xf32>
    %cst_21 = arith.constant 0.000000e+00 : f32
    %102 = vector.broadcast %cst_21 : f32 to vector<8x128xf32>
    %103 = arith.maximumf %101, %102 : vector<8x128xf32>
    %104 = vector.extract_strided_slice %2 {offsets = [16, 0], sizes = [8, 128], strides = [1, 1]} : vector<56x128xf32> to vector<8x128xf32>
    %105 = vector.extract_strided_slice %4 {offsets = [48, 0], sizes = [8, 128], strides = [1, 1]} : vector<56x128xf32> to vector<8x128xf32>
    %106 = arith.addf %104, %105 : vector<8x128xf32>
    %107 = vector.broadcast %5 : vector<1x128xf32> to vector<8x128xf32>
    %108 = arith.addf %106, %107 : vector<8x128xf32>
    %cst_22 = arith.constant 0.000000e+00 : f32
    %109 = vector.broadcast %cst_22 : f32 to vector<8x128xf32>
    %110 = arith.maximumf %108, %109 : vector<8x128xf32>
    %111 = vector.extract_strided_slice %2 {offsets = [24, 0], sizes = [8, 128], strides = [1, 1]} : vector<56x128xf32> to vector<8x128xf32>
    %112 = vector.extract_strided_slice %4 {offsets = [32, 0], sizes = [8, 128], strides = [1, 1]} : vector<56x128xf32> to vector<8x128xf32>
    %113 = arith.addf %111, %112 : vector<8x128xf32>
    %114 = vector.broadcast %5 : vector<1x128xf32> to vector<8x128xf32>
    %115 = arith.addf %113, %114 : vector<8x128xf32>
    %cst_23 = arith.constant 0.000000e+00 : f32
    %116 = vector.broadcast %cst_23 : f32 to vector<8x128xf32>
    %117 = arith.maximumf %115, %116 : vector<8x128xf32>
    %118 = vector.extract_strided_slice %2 {offsets = [24, 0], sizes = [8, 128], strides = [1, 1]} : vector<56x128xf32> to vector<8x128xf32>
    %119 = vector.extract_strided_slice %4 {offsets = [40, 0], sizes = [8, 128], strides = [1, 1]} : vector<56x128xf32> to vector<8x128xf32>
    %120 = arith.addf %118, %119 : vector<8x128xf32>
    %121 = vector.broadcast %5 : vector<1x128xf32> to vector<8x128xf32>
    %122 = arith.addf %120, %121 : vector<8x128xf32>
    %cst_24 = arith.constant 0.000000e+00 : f32
    %123 = vector.broadcast %cst_24 : f32 to vector<8x128xf32>
    %124 = arith.maximumf %122, %123 : vector<8x128xf32>
    %125 = vector.extract_strided_slice %2 {offsets = [24, 0], sizes = [8, 128], strides = [1, 1]} : vector<56x128xf32> to vector<8x128xf32>
    %126 = vector.extract_strided_slice %4 {offsets = [48, 0], sizes = [8, 128], strides = [1, 1]} : vector<56x128xf32> to vector<8x128xf32>
    %127 = arith.addf %125, %126 : vector<8x128xf32>
    %128 = vector.broadcast %5 : vector<1x128xf32> to vector<8x128xf32>
    %129 = arith.addf %127, %128 : vector<8x128xf32>
    %cst_25 = arith.constant 0.000000e+00 : f32
    %130 = vector.broadcast %cst_25 : f32 to vector<8x128xf32>
    %131 = arith.maximumf %129, %130 : vector<8x128xf32>
    %132 = vector.extract_strided_slice %2 {offsets = [32, 0], sizes = [8, 128], strides = [1, 1]} : vector<56x128xf32> to vector<8x128xf32>
    %133 = vector.extract_strided_slice %4 {offsets = [40, 0], sizes = [8, 128], strides = [1, 1]} : vector<56x128xf32> to vector<8x128xf32>
    %134 = arith.addf %132, %133 : vector<8x128xf32>
    %135 = vector.broadcast %5 : vector<1x128xf32> to vector<8x128xf32>
    %136 = arith.addf %134, %135 : vector<8x128xf32>
    %cst_26 = arith.constant 0.000000e+00 : f32
    %137 = vector.broadcast %cst_26 : f32 to vector<8x128xf32>
    %138 = arith.maximumf %136, %137 : vector<8x128xf32>
    %139 = vector.extract_strided_slice %2 {offsets = [32, 0], sizes = [8, 128], strides = [1, 1]} : vector<56x128xf32> to vector<8x128xf32>
    %140 = vector.extract_strided_slice %4 {offsets = [48, 0], sizes = [8, 128], strides = [1, 1]} : vector<56x128xf32> to vector<8x128xf32>
    %141 = arith.addf %139, %140 : vector<8x128xf32>
    %142 = vector.broadcast %5 : vector<1x128xf32> to vector<8x128xf32>
    %143 = arith.addf %141, %142 : vector<8x128xf32>
    %cst_27 = arith.constant 0.000000e+00 : f32
    %144 = vector.broadcast %cst_27 : f32 to vector<8x128xf32>
    %145 = arith.maximumf %143, %144 : vector<8x128xf32>
    %146 = vector.extract_strided_slice %2 {offsets = [40, 0], sizes = [8, 128], strides = [1, 1]} : vector<56x128xf32> to vector<8x128xf32>
    %147 = vector.extract_strided_slice %4 {offsets = [48, 0], sizes = [8, 128], strides = [1, 1]} : vector<56x128xf32> to vector<8x128xf32>
    %148 = arith.addf %146, %147 : vector<8x128xf32>
    %149 = vector.broadcast %5 : vector<1x128xf32> to vector<8x128xf32>
    %150 = arith.addf %148, %149 : vector<8x128xf32>
    %cst_28 = arith.constant 0.000000e+00 : f32
    %151 = vector.broadcast %cst_28 : f32 to vector<8x128xf32>
    %152 = arith.maximumf %150, %151 : vector<8x128xf32>
    %153 = tpu.concatenate %12, %19, %26, %33, %40, %47, %54, %61, %68, %75, %82, %89, %96, %103, %110, %117 in 1 : vector<8x128xf32>, vector<8x128xf32>, vector<8x128xf32>, vector<8x128xf32>, vector<8x128xf32>, vector<8x128xf32>, vector<8x128xf32>, vector<8x128xf32>, vector<8x128xf32>, vector<8x128xf32>, vector<8x128xf32>, vector<8x128xf32>, vector<8x128xf32>, vector<8x128xf32>, vector<8x128xf32>, vector<8x128xf32> -> vector<8x2048xf32>
    %154 = tpu.concatenate %124, %131, %138, %145, %152 in 1 : vector<8x128xf32>, vector<8x128xf32>, vector<8x128xf32>, vector<8x128xf32>, vector<8x128xf32> -> vector<8x640xf32>
    %155 = tpu.concatenate %153, %154 in 1 : vector<8x2048xf32>, vector<8x640xf32> -> vector<8x2688xf32>
    %c0_29 = arith.constant 0 : index
    %c0_30 = arith.constant 0 : index
    %156 = vector.load %arg4[%c0_29, %c0_30] : memref<2688x128xf32, #tpu.memory_space<vmem>>, vector<2688x128xf32>
    %cst_31 = arith.constant dense<0.000000e+00> : vector<8x128xf32>
    %157 = tpu.matmul %155, %156, %cst_31 {dimension_numbers = #tpu.dot_dimension_numbers<[1], [0], [0], [1], [0, 0, 1, 1], [], []>} : vector<8x2688xf32>, vector<2688x128xf32>, vector<8x128xf32> -> vector<8x128xf32>
    %c0_32 = arith.constant 0 : index
    %c0_33 = arith.constant 0 : index
    %158 = vector.load %arg5[%c0_32, %c0_33] : memref<1x128xf32, #tpu.memory_space<vmem>>, vector<1x128xf32>
    %159 = vector.broadcast %158 : vector<1x128xf32> to vector<8x128xf32>
    %160 = arith.addf %157, %159 : vector<8x128xf32>
    %cst_34 = arith.constant 0.000000e+00 : f32
    %161 = vector.broadcast %cst_34 : f32 to vector<8x128xf32>
    %162 = arith.maximumf %160, %161 : vector<8x128xf32>
    %c0_35 = arith.constant 0 : index
    %c0_36 = arith.constant 0 : index
    %163 = vector.load %arg6[%c0_35, %c0_36] : memref<8x128xf32, #tpu.memory_space<vmem>>, vector<8x128xf32>
    tpu.vector_store %arg6[%c0_35, %c0_36], %162 {strides = array<i32>} : memref<8x128xf32, #tpu.memory_space<vmem>>, vector<8x128xf32>,
    return
  }
}

</mosaic_0001>

<bundles_post_ra>
// kernel: relation_context_encoder_forward.1
= control target key start
LH: loop header
LB: loop body
LE: loop exit
PB: predicated region body
PF: predicated region fallthrough
CT: control target
= control target key end

     0   :  { %vm31_vm0 = vcmask 64512   ;;  %v2268_v0 = vmov 0.0   ;;  %vm2269_vm1 = vmmov 0   ;;  %s3497_s1 = inlined_call_operand.vmem [shape: f32[8,128], index: 1, kind: input, shape index: {}]   ;;  %s3498_s0 = inlined_call_operand.vmem [shape: f32[56,8], index: 0, kind: input, shape index: {}]   ;;  %s3499_s2 = inlined_call_operand.vmem [shape: f32[8,128], index: 2, kind: input, shape index: {}]   ;;  %s3500_s4 = inlined_call_operand.vmem [shape: f32[2688,128], index: 4, kind: input, shape index: {}]   ;;  %s3501_s3 = inlined_call_operand.vmem [shape: f32[1,128], index: 3, kind: input, shape index: {}]   ;;  %s3502_s5 = inlined_call_operand.vmem [shape: f32[1,128], index: 5, kind: input, shape index: {}]   ;;  %s3503_s6 = inlined_call_operand.vmem [shape: f32[8,128], index: 6, kind: output, shape index: {}]  }
   0x1   :  { %1840 = vmatprep.subr.mxu1 %v2268_v0  ;;  %v30_v1 = vld [vmem:[%s3497_s1] sm:$0xff]  ;;  %1842 = vmatprep.mubr.msk.f32.mxu1 %vm2269_vm1, %v2268_v0  ;;  %v24_v4 = vld [vmem:[%s3498_s0 + $0x8] sm:$0xff]  ;;  %v25_v5 = vld [vmem:[%s3498_s0 + $0x10] sm:$0xff] }
   0x2   :  { %v23_v2 = vld [vmem:[%s3498_s0] sm:$0xff]  ;;  %1841 = vmatpush3.msra.mxu1 %v30_v1  ;;  %v26_v6 = vld [vmem:[%s3498_s0 + $0x18] sm:$0xff]  ;;  %v28_v8 = vld [vmem:[%s3498_s0 + $0x28] sm:$0xff] }
   0x3   :  { %v152_v3 = vld [vmem:[%s3499_s2] sm:$0xff]  ;;  %1843 = vmatmul.mubr.msk.f32.vlgmr.msra.gmra.mrb[0].mxu1 %vm31_vm0, %v23_v2  ;;  %1863 = vmatprep.subr.mxu1 %v2268_v0  ;;  %v29_v9 = vld [vmem:[%s3498_s0 + $0x30] sm:$0xff]  ;;  %v339_v11 = vld [vmem:[%s3500_s4 + $0x88] sm:$0xff] }
   0x4   :  { %1864 = vmatpush3.msra.mxu1 %v152_v3  ;;  %1845 = vmatprep.mubr.msk.f32.mxu1 %vm2269_vm1, %v2268_v0  ;;  %v27_v7 = vld [vmem:[%s3498_s0 + $0x20] sm:$0xff]  ;;  %v323_v14 = vld [vmem:[%s3500_s4 + $0x8] sm:$0xff]  ;;  %v340_v16 = vld [vmem:[%s3500_s4 + $0x90] sm:$0xff] }
   0x5   :  { %v338_v10 = vld [vmem:[%s3500_s4 + $0x80] sm:$0xff]  ;;  %v341_v17 = vld [vmem:[%s3500_s4 + $0x98] sm:$0xff]  ;;  %v324_v19 = vld [vmem:[%s3500_s4 + $0x10] sm:$0xff] }
   0x6   :  { %v1921_v12 = vpack.c.bf16 %v339_v11, %v338_v10  ;;  %v322_v13 = vld [vmem:[%s3500_s4] sm:$0xff]  ;;  %v1925_v18 = vpack.c.bf16 %v341_v17, %v340_v16  ;;  %v325_v20 = vld [vmem:[%s3500_s4 + $0x18] sm:$0xff]  ;;  %v343_v23 = vld [vmem:[%s3500_s4 + $0xa8] sm:$0xff] }
   0x7   :  { %1846 = vmatmul.mubr.msk.f32.gmra.mrb[2].mxu1 %vm31_vm0, %v24_v4  ;;  %v1923_v15 = vpack.c.bf16 %v323_v14, %v322_v13  ;;  %v1927_v21 = vpack.c.bf16 %v325_v20, %v324_v19  ;;  %v342_v22 = vld [vmem:[%s3500_s4 + $0xa0] sm:$0xff]  ;;  %v371_v26 = vld [vmem:[%s3500_s4 + $0x188] sm:$0xff]  ;;  %v344_v34 = vld [vmem:[%s3500_s4 + $0xb0] sm:$0xff] }
   0x8   :  { %1848 = vmatprep.mubr.msk.f32.mxu1 %vm2269_vm1, %v2268_v0  ;;  %1922 = vmatprep.subr.bf16.mxu0 %v1921_v12  ;;  %v370_v24 = vld [vmem:[%s3500_s4 + $0x180] sm:$0xff]  ;;  %v1929_v25 = vpack.c.bf16 %v343_v23, %v342_v22  ;;  %v327_v28 = vld [vmem:[%s3500_s4 + $0x28] sm:$0xff]  ;;  %v345_v35 = vld [vmem:[%s3500_s4 + $0xb8] sm:$0xff] }
   0x9   :  { %1924 = vmatpush3.bf16.msra.mxu0 %v1923_v15  ;;  %v326_v27 = vld [vmem:[%s3500_s4 + $0x20] sm:$0xff]  ;;  %v1953_v29 = vpack.c.bf16 %v371_v26, %v370_v24  ;;  %v355_v32 = vld [vmem:[%s3500_s4 + $0x108] sm:$0xff]  ;;  %v372_v36 = vld [vmem:[%s3500_s4 + $0x190] sm:$0xff]  ;;  %v1933_v37 = vpack.c.bf16 %v345_v35, %v344_v34 }
   0xa   :  { %1926 = vmatprep.subr.bf16.mxu0 %v1925_v18  ;;  %v1931_v30 = vpack.c.bf16 %v327_v28, %v326_v27  ;;  %v354_v31 = vld [vmem:[%s3500_s4 + $0x100] sm:$0xff]  ;;  %v373_v38 = vld [vmem:[%s3500_s4 + $0x198] sm:$0xff]  ;;  %v328_v39 = vld [vmem:[%s3500_s4 + $0x30] sm:$0xff] }
   0xb   :  { %1849 = vmatmul.mubr.msk.f32.gmra.mrb[4].mxu1 %vm31_vm0, %v25_v5  ;;  %v1955_v33 = vpack.c.bf16 %v355_v32, %v354_v31  ;;  %1954 = vmatprep.subr.bf16.mxu1 %v1953_v29  ;;  %v329_v40 = vld [vmem:[%s3500_s4 + $0x38] sm:$0xff]  ;;  %v1957_v41 = vpack.c.bf16 %v373_v38, %v372_v36  ;;  %v356_v43 = vld [vmem:[%s3500_s4 + $0x110] sm:$0xff]  ;;  %v346_v46 = vld [vmem:[%s3500_s4 + $0xc0] sm:$0xff] }
   0xc   :  { %1851 = vmatprep.mubr.msk.f32.mxu1 %vm2269_vm1, %v2268_v0  ;;  %v1935_v42 = vpack.c.bf16 %v329_v40, %v328_v39  ;;  %v357_v44 = vld [vmem:[%s3500_s4 + $0x118] sm:$0xff]  ;;  %v347_v47 = vld [vmem:[%s3500_s4 + $0xc8] sm:$0xff]  ;;  %v374_v48 = vld [vmem:[%s3500_s4 + $0x1a0] sm:$0xff] }
   0xd   :  { %1928 = vmatpush3.bf16.msra.mxu0 %v1927_v21  ;;  %v1959_v45 = vpack.c.bf16 %v357_v44, %v356_v43  ;;  %v1937_v49 = vpack.c.bf16 %v347_v47, %v346_v46  ;;  %v375_v50 = vld [vmem:[%s3500_s4 + $0x1a8] sm:$0xff]  ;;  %v330_v51 = vld [vmem:[%s3500_s4 + $0x40] sm:$0xff]  ;;  %v348_v58 = vld [vmem:[%s3500_s4 + $0xd0] sm:$0xff] }
   0xe   :  { %1930 = vmatprep.subr.bf16.mxu0 %v1929_v25  ;;  %v331_v52 = vld [vmem:[%s3500_s4 + $0x48] sm:$0xff]  ;;  %v1961_v53 = vpack.c.bf16 %v375_v50, %v374_v48  ;;  %v358_v55 = vld [vmem:[%s3500_s4 + $0x120] sm:$0xff]  ;;  %v349_v59 = vld [vmem:[%s3500_s4 + $0xd8] sm:$0xff] }
   0xf   :  { %1852 = vmatmul.mubr.msk.f32.gmra.mrb[6].mxu1 %vm31_vm0, %v26_v6  ;;  %v1939_v54 = vpack.c.bf16 %v331_v52, %v330_v51  ;;  %v359_v56 = vld [vmem:[%s3500_s4 + $0x128] sm:$0xff]  ;;  %v376_v60 = vld [vmem:[%s3500_s4 + $0x1b0] sm:$0xff]  ;;  %v1941_v61 = vpack.c.bf16 %v349_v59, %v348_v58  ;;  %v377_v62 = vld [vmem:[%s3500_s4 + $0x1b8] sm:$0xff] }
  0x10   :  { %1854 = vmatprep.mubr.msk.f32.mxu1 %vm2269_vm1, %v2268_v0  ;;  %v1963_v57 = vpack.c.bf16 %v359_v56, %v358_v55  ;;  %v332_v63 = vld [vmem:[%s3500_s4 + $0x50] sm:$0xff]  ;;  %v333_v1 = vld [vmem:[%s3500_s4 + $0x58] sm:$0xff]  ;;  %v378_v10 = vld [vmem:[%s3500_s4 + $0x1c0] sm:$0xff] }
  0x11   :  { %1932 = vmatpush3.bf16.msra.mxu0 %v1931_v30  ;;  %v1943_v3 = vpack.c.bf16 %v333_v1, %v332_v63  ;;  %v379_v11 = vld [vmem:[%s3500_s4 + $0x1c8] sm:$0xff]  ;;  %v334_v12 = vld [vmem:[%s3500_s4 + $0x60] sm:$0xff]  ;;  %v352_v19 = vld [vmem:[%s3500_s4 + $0xf0] sm:$0xff] }
  0x12   :  { %1934 = vmatprep.subr.bf16.mxu0 %v1933_v37  ;;  %v1969_v13 = vpack.c.bf16 %v379_v11, %v378_v10  ;;  %v335_v14 = vld [vmem:[%s3500_s4 + $0x68] sm:$0xff]  ;;  %v362_v15 = vld [vmem:[%s3500_s4 + $0x140] sm:$0xff]  ;;  %v353_v20 = vld [vmem:[%s3500_s4 + $0xf8] sm:$0xff] }
  0x13   :  { %1855 = vmatmul.mubr.msk.f32.gmra.mrb[8].mxu1 %vm31_vm0, %v27_v7  ;;  %v363_v16 = vld [vmem:[%s3500_s4 + $0x148] sm:$0xff]  ;;  %v1947_v17 = vpack.c.bf16 %v335_v14, %v334_v12  ;;  %v380_v21 = vld [vmem:[%s3500_s4 + $0x1d0] sm:$0xff]  ;;  %v1949_v22 = vpack.c.bf16 %v353_v20, %v352_v19  ;;  %v381_v23 = vld [vmem:[%s3500_s4 + $0x1d8] sm:$0xff] }
  0x14   :  { %1857 = vmatprep.mubr.msk.f32.mxu1 %vm2269_vm1, %v2268_v0  ;;  %v1971_v18 = vpack.c.bf16 %v363_v16, %v362_v15  ;;  %v336_v24 = vld [vmem:[%s3500_s4 + $0x70] sm:$0xff]  ;;  %v337_v25 = vld [vmem:[%s3500_s4 + $0x78] sm:$0xff]  ;;  %v1973_v26 = vpack.c.bf16 %v381_v23, %v380_v21  ;;  %v382_v31 = vld [vmem:[%s3500_s4 + $0x1e0] sm:$0xff] }
  0x15   :  { %1936 = vmatpush3.bf16.msra.mxu0 %v1935_v42  ;;  %v1951_v27 = vpack.c.bf16 %v337_v25, %v336_v24  ;;  %v364_v28 = vld [vmem:[%s3500_s4 + $0x150] sm:$0xff]  ;;  %v365_v29 = vld [vmem:[%s3500_s4 + $0x158] sm:$0xff]  ;;  %v383_v32 = vld [vmem:[%s3500_s4 + $0x1e8] sm:$0xff] }
  0x16   :  { %1938 = vmatprep.subr.bf16.mxu0 %v1937_v49  ;;  %v1975_v30 = vpack.c.bf16 %v365_v29, %v364_v28  ;;  %v1977_v34 = vpack.c.bf16 %v383_v32, %v382_v31  ;;  %v403_v35 = vld [vmem:[%s3500_s4 + $0x288] sm:$0xff]  ;;  %v366_v36 = vld [vmem:[%s3500_s4 + $0x160] sm:$0xff]  ;;  %v384_v40 = vld [vmem:[%s3500_s4 + $0x1f0] sm:$0xff] }
  0x17   :  { %1858 = vmatmul.mubr.msk.f32.gmra.mrb[10].mxu1 %vm31_vm0, %v28_v8  ;;  %v367_v37 = vld [vmem:[%s3500_s4 + $0x168] sm:$0xff]  ;;  %v368_v43 = vld [vmem:[%s3500_s4 + $0x170] sm:$0xff]  ;;  %v369_v44 = vld [vmem:[%s3500_s4 + $0x178] sm:$0xff] }
  0x18   :  { %1860 = vmatprep.mubr.msk.f32.mxu1 %vm2269_vm1, %v2268_v0  ;;  %v1979_v39 = vpack.c.bf16 %v367_v37, %v366_v36  ;;  %v434_v46 = vld [vmem:[%s3500_s4 + $0x380] sm:$0xff]  ;;  %v435_v47 = vld [vmem:[%s3500_s4 + $0x388] sm:$0xff]  ;;  %v404_v15 = vld [vmem:[%s3500_s4 + $0x290] sm:$0xff] }
  0x19   :  { %1940 = vmatpush3.bf16.msra.mxu0 %v1939_v54  ;;  %v2017_v48 = vpack.c.bf16 %v435_v47, %v434_v46  ;;  %v386_v12 = vld [vmem:[%s3500_s4 + $0x200] sm:$0xff]  ;;  %v405_v16 = vld [vmem:[%s3500_s4 + $0x298] sm:$0xff]  ;;  %v388_v23 = vld [vmem:[%s3500_s4 + $0x210] sm:$0xff] }
  0x1a   :  { %1942 = vmatprep.subr.bf16.mxu0 %v1941_v61  ;;  %v1989_v25 = vpack.c.bf16 %v405_v16, %v404_v15  ;;  %v407_v28 = vld [vmem:[%s3500_s4 + $0x2a8] sm:$0xff]  ;;  %v418_v36 = vld [vmem:[%s3500_s4 + $0x300] sm:$0xff]  ;;  %v436_v46 = vld [vmem:[%s3500_s4 + $0x390] sm:$0xff] }
  0x1b   :  { %1861 = vmatmul.mubr.msk.f32.gmra.mrb[12].mxu1 %vm31_vm0, %v29_v9  ;;  %v419_v37 = vld [vmem:[%s3500_s4 + $0x308] sm:$0xff]  ;;  %v437_v47 = vld [vmem:[%s3500_s4 + $0x398] sm:$0xff] }
  0x1c   :  { %1865 = vmatprep.mubr.msk.f32.mxu1 %vm2269_vm1, %v2268_v0  ;;  %v439_v15 = vld [vmem:[%s3500_s4 + $0x3a8] sm:$0xff] }
  0x1d   :  { %1944 = vmatpush3.bf16.msra.mxu0 %v1943_v3 }
  0x1f   :  { %1866 = vmatmul.mubr.msk.f32.vlgmr.msra.gmra.mrb[14].mxu1 %vm31_vm0, %v23_v2  ;;  %v1965_v2 = vpack.c.bf16 %v377_v62, %v376_v60 }
  0x20   :  { %1868 = vmatprep.mubr.msk.f32.mxu1 %vm2269_vm1, %v2268_v0  ;;  %1956 = vmatpush3.bf16.msra.mxu1 %v1955_v33  ;;  %v402_v33 = vld [vmem:[%s3500_s4 + $0x280] sm:$0xff] }
  0x21   :  { %1958 = vmatprep.subr.bf16.mxu1 %v1957_v41  ;;  %v1985_v38 = vpack.c.bf16 %v403_v35, %v402_v33  ;;  %v385_v41 = vld [vmem:[%s3500_s4 + $0x1f8] sm:$0xff]  ;;  %v391_v35 = vld [vmem:[%s3500_s4 + $0x228] sm:$0xff] }
  0x22   :  { %v1981_v42 = vpack.c.bf16 %v385_v41, %v384_v40 }
  0x23   :  { %1869 = vmatmul.mubr.msk.f32.gmra.mrb[16].mxu1 %vm31_vm0, %v24_v4  ;;  %v360_v4 = vld [vmem:[%s3500_s4 + $0x130] sm:$0xff] }
  0x24   :  { %1871 = vmatprep.mubr.msk.f32.mxu1 %vm2269_vm1, %v2268_v0  ;;  %1960 = vmatpush3.bf16.msra.mxu1 %v1959_v45  ;;  %v1983_v45 = vpack.c.bf16 %v369_v44, %v368_v43 }
  0x25   :  { %1962 = vmatprep.subr.bf16.mxu1 %v1961_v53 }
  0x27   :  { %1872 = vmatmul.mubr.msk.f32.gmra.mrb[18].mxu1 %vm31_vm0, %v25_v5  ;;  %v361_v5 = vld [vmem:[%s3500_s4 + $0x138] sm:$0xff] }
  0x28   :  { %1874 = vmatprep.mubr.msk.f32.mxu1 %vm2269_vm1, %v2268_v0  ;;  %1964 = vmatpush3.bf16.msra.mxu1 %v1963_v57 }
  0x29   :  { %1966 = vmatprep.subr.bf16.mxu1 %v1965_v2 }
  0x2b   :  { %1875 = vmatmul.mubr.msk.f32.gmra.mrb[20].mxu1 %vm31_vm0, %v26_v6  ;;  %v1967_v6 = vpack.c.bf16 %v361_v5, %v360_v4  ;;  %v2597_v5 = vld [vmem:[%s3501_s3] ss:$0 sm:$0xff] }
  0x2c   :  { %1877 = vmatprep.mubr.msk.f32.mxu1 %vm2269_vm1, %v2268_v0 }
  0x2d   :  { %1968 = vmatpush3.bf16.msra.mxu1 %v1967_v6 }
  0x2e   :  { %1970 = vmatprep.subr.bf16.mxu1 %v1969_v13  ;;  %v387_v13 = vld [vmem:[%s3500_s4 + $0x208] sm:$0xff] }
  0x2f   :  { %1878 = vmatmul.mubr.msk.f32.gmra.mrb[22].mxu1 %vm31_vm0, %v27_v7  ;;  %v350_v7 = vld [vmem:[%s3500_s4 + $0xe0] sm:$0xff] }
  0x30   :  { %1880 = vmatprep.mubr.msk.f32.mxu1 %vm2269_vm1, %v2268_v0 }
  0x31   :  { %1972 = vmatpush3.bf16.msra.mxu1 %v1971_v18 }
  0x32   :  { %1974 = vmatprep.subr.bf16.mxu1 %v1973_v26  ;;  %v389_v26 = vld [vmem:[%s3500_s4 + $0x218] sm:$0xff] }
  0x33   :  { %1881 = vmatmul.mubr.msk.f32.gmra.mrb[24].mxu1 %vm31_vm0, %v28_v8  ;;  %v351_v8 = vld [vmem:[%s3500_s4 + $0xe8] sm:$0xff]  ;;  %v1991_v40 = vpack.c.bf16 %v389_v26, %v388_v23 }
  0x34   :  { %1883 = vmatprep.mubr.msk.f32.mxu1 %vm2269_vm1, %v2268_v0 }
  0x35   :  { %1976 = vmatpush3.bf16.msra.mxu1 %v1975_v30  ;;  %v390_v30 = vld [vmem:[%s3500_s4 + $0x220] sm:$0xff] }
  0x36   :  { %1978 = vmatprep.subr.bf16.mxu1 %v1977_v34 }
  0x37   :  { %1884 = vmatmul.mubr.msk.f32.gmra.mrb[26].mxu1 %vm31_vm0, %v29_v9  ;;  %v1945_v9 = vpack.c.bf16 %v351_v8, %v350_v7 }
  0x39   :  { %1946 = vmatprep.subr.bf16.mxu0 %v1945_v9  ;;  %1980 = vmatpush3.bf16.msra.mxu1 %v1979_v39 }
  0x3a   :  { %1948 = vmatpush3.bf16.msra.mxu0 %v1947_v17  ;;  %1982 = vmatprep.subr.bf16.mxu1 %v1981_v42 }
  0x3b   :  { %1950 = vmatprep.subr.bf16.mxu0 %v1949_v22  ;;  %v1987_v22 = vpack.c.bf16 %v387_v13, %v386_v12 }
  0x3d   :  { %1984 = vmatpush3.bf16.msra.mxu1 %v1983_v45 }
  0x3e   :  { %1952 = vmatpush3.bf16.msra.mxu0 %v1951_v27  ;;  %2018 = vmatprep.subr.bf16.mxu1 %v2017_v48  ;;  %v406_v27 = vld [vmem:[%s3500_s4 + $0x2a0] sm:$0xff] }
  0x3f   :  { %1986 = vmatprep.subr.bf16.mxu0 %v1985_v38  ;;  %v1993_v41 = vpack.c.bf16 %v407_v28, %v406_v27 }
  0xd6   :  { %v2581_v49 = vpop.f32.mrb[0].mxu1 }
  0xd7   :  { %v1844_v50 = vpop.f32.mrb[1].mxu1 }
  0xd8   :  { %v1995_v50 = vpack.c.bf16 %v391_v35, %v390_v30  ;;  %v394_v30 = vld [vmem:[%s3500_s4 + $0x240] sm:$0xff]  ;;  %v440_v35 = vld [vmem:[%s3500_s4 + $0x3b0] sm:$0xff] }
  0xda   :  { %v2583_v51 = vpop.f32.mrb[2].mxu1 }
  0xdb   :  { %v1847_v52 = vpop.f32.mrb[3].mxu1 }
  0xdc   :  { %v2019_v52 = vpack.c.bf16 %v419_v37, %v418_v36  ;;  %v441_v36 = vld [vmem:[%s3500_s4 + $0x3b8] sm:$0xff]  ;;  %v412_v37 = vld [vmem:[%s3500_s4 + $0x2d0] sm:$0xff] }
  0xde   :  { %v2585_v53 = vpop.f32.mrb[4].mxu1 }
  0xdf   :  { %v1850_v54 = vpop.f32.mrb[5].mxu1 }
  0xe0   :  { %v408_v54 = vld [vmem:[%s3500_s4 + $0x2b0] sm:$0xff] }
  0xe2   :  { %v2587_v55 = vpop.f32.mrb[6].mxu1 }
  0xe3   :  { %v1853_v56 = vpop.f32.mrb[7].mxu1 }
  0xe4   :  { %v409_v56 = vld [vmem:[%s3500_s4 + $0x2b8] sm:$0xff] }
  0xe5   :  { %v1997_v13 = vpack.c.bf16 %v409_v56, %v408_v54  ;;  %v397_v56 = vld [vmem:[%s3500_s4 + $0x258] sm:$0xff] }
  0xe6   :  { %v2589_v57 = vpop.f32.mrb[8].mxu1 }
  0xe7   :  { %v1856_v58 = vpop.f32.mrb[9].mxu1 }
  0xe8   :  { %v392_v58 = vld [vmem:[%s3500_s4 + $0x230] sm:$0xff] }
  0xea   :  { %v2591_v59 = vpop.f32.mrb[10].mxu1 }
  0xeb   :  { %v1859_v60 = vpop.f32.mrb[11].mxu1 }
  0xee   :  { %v149_v61 = vpop.f32.mrb[12].mxu1 }
  0xef   :  { %v1862_v62 = vpop.f32.mrb[13].mxu1 }
  0xf2   :  { %v219_v63 = vpop.f32.mrb[14].mxu1 }
  0xf3   :  { %v1867_v1 = vpop.f32.mrb[15].mxu1 }
  0xf6   :  { %v223_v2 = vpop.f32.mrb[16].mxu1 }
  0xf7   :  { %v253_v3 = vadd.f32 %v223_v2, %v2581_v49  ;;  %v1870_v4 = vpop.f32.mrb[17].mxu1 }
  0xf8   :  { %v420_v4 = vld [vmem:[%s3500_s4 + $0x310] sm:$0xff] }
  0xf9   :  { %v260_v10 = vadd.f32 %v2597_v5, %v253_v3  ;;  %v393_v3 = vld [vmem:[%s3500_s4 + $0x238] sm:$0xff] }
  0xfa   :  { %v228_v6 = vpop.f32.mrb[18].mxu1 }
  0xfb   :  { %v262_v7 = vadd.f32 %v228_v6, %v2581_v49  ;;  %v2601_v8 = vadd.f32 %v228_v6, %v2583_v51  ;;  %v1873_v9 = vpop.f32.mrb[19].mxu1  ;;  %v261_v24 = vmax.f32 %v260_v10, 0.0  ;;  %v421_v6 = vld [vmem:[%s3500_s4 + $0x318] sm:$0xff] }
  0xfc   :  { %v2021_v9 = vpack.c.bf16 %v437_v47, %v436_v46  ;;  %v2029_v46 = vpack.c.bf16 %v441_v36, %v440_v35  ;;  %v396_v47 = vld [vmem:[%s3500_s4 + $0x250] sm:$0xff] }
  0xfd   :  { %v263_v11 = vadd.f32 %v2597_v5, %v262_v7 }
  0xfe   :  { %v233_v14 = vpop.f32.mrb[20].mxu1 }
  0xff   :  { %v265_v17 = vadd.f32 %v233_v14, %v2581_v49  ;;  %v280_v18 = vadd.f32 %v233_v14, %v2583_v51  ;;  %v2620_v19 = vadd.f32 %v233_v14, %v2585_v53  ;;  %v1876_v20 = vpop.f32.mrb[21].mxu1  ;;  %v264_v21 = vmax.f32 %v263_v11, 0.0  ;;  %v438_v14 = vld [vmem:[%s3500_s4 + $0x3a0] sm:$0xff] }
 0x100   :  { %v2023_v20 = vpack.c.bf16 %v421_v6, %v420_v4  ;;  %v398_v6 = vld [vmem:[%s3500_s4 + $0x260] sm:$0xff] }
 0x101   :  { %729 = vmatprep.mubr.f32.mxu0 %v264_v21  ;;  %v266_v38 = vadd.f32 %v2597_v5, %v265_v17  ;;  %v281_v45 = vadd.f32 %v2597_v5, %v280_v18  ;;  %v1999_v18 = vpack.c.bf16 %v393_v3, %v392_v58  ;;  %v410_v21 = vld [vmem:[%s3500_s4 + $0x2c0] sm:$0xff]  ;;  %v2007_v3 = vpack.c.bf16 %v397_v56, %v396_v47 }
 0x102   :  { %v238_v29 = vpop.f32.mrb[22].mxu1  ;;  %730 = vmatmul.mubr.f32.vlgmr.msra.gmra.mrb[0].mxu0 %v261_v24  ;;  %v442_v58 = vld [vmem:[%s3500_s4 + $0x3c0] sm:$0xff] }
 0x103   :  { %v268_v31 = vadd.f32 %v238_v29, %v2581_v49  ;;  %v283_v32 = vadd.f32 %v238_v29, %v2583_v51  ;;  %v295_v33 = vadd.f32 %v238_v29, %v2585_v53  ;;  %v1879_v34 = vpop.f32.mrb[23].mxu1  ;;  %v304_v39 = vadd.f32 %v238_v29, %v2587_v55  ;;  %1988 = vmatpush3.bf16.msra.mxu0 %v1987_v22  ;;  %v411_v22 = vld [vmem:[%s3500_s4 + $0x2c8] sm:$0xff] }
 0x104   :  { %1990 = vmatprep.subr.bf16.mxu0 %v1989_v25  ;;  %v267_v7 = vmax.f32 %v266_v38, 0.0  ;;  %v282_v12 = vmax.f32 %v281_v45, 0.0  ;;  %v2025_v29 = vpack.c.bf16 %v439_v15, %v438_v14  ;;  %v395_v34 = vld [vmem:[%s3500_s4 + $0x248] sm:$0xff]  ;;  %v413_v38 = vld [vmem:[%s3500_s4 + $0x2d8] sm:$0xff]  ;;  %v416_v15 = vld [vmem:[%s3500_s4 + $0x2f0] sm:$0xff] }
 0x105   :  { %v2652_v42 = vadd.f32 %v2597_v5, %v283_v32  ;;  %v2655_v43 = vadd.f32 %v2597_v5, %v295_v33  ;;  %v269_v44 = vadd.f32 %v2597_v5, %v268_v31  ;;  %v2675_v60 = vadd.f32 %v2597_v5, %v304_v39  ;;  %v422_v31 = vld [vmem:[%s3500_s4 + $0x320] sm:$0xff]  ;;  %v445_v14 = vld [vmem:[%s3500_s4 + $0x3d8] sm:$0xff] }
 0x106   :  { %v243_v48 = vpop.f32.mrb[24].mxu1  ;;  %v2003_v45 = vpack.c.bf16 %v395_v34, %v394_v30  ;;  %v2005_v54 = vpack.c.bf16 %v413_v38, %v412_v37  ;;  %v447_v30 = vld [vmem:[%s3500_s4 + $0x3e8] sm:$0xff]  ;;  %v450_v37 = vld [vmem:[%s3500_s4 + $0x400] sm:$0xff] }
 0x107   :  { %v2678_v61 = vadd.f32 %v243_v48, %v2581_v49  ;;  %v307_v62 = vadd.f32 %v243_v48, %v2587_v55  ;;  %v313_v63 = vadd.f32 %v243_v48, %v2589_v57  ;;  %v1882_v1 = vpop.f32.mrb[25].mxu1  ;;  %v270_v2 = vmax.f32 %v269_v44, 0.0  ;;  %1992 = vmatpush3.bf16.msra.mxu0 %v1991_v40  ;;  %v431_v34 = vld [vmem:[%s3500_s4 + $0x368] sm:$0xff] }
 0x108   :  { %v2692_v10 = vadd.f32 %v243_v48, %v2583_v51  ;;  %v298_v11 = vadd.f32 %v243_v48, %v2585_v53  ;;  %1994 = vmatprep.subr.bf16.mxu0 %v1993_v41  ;;  %v424_v48 = vld [vmem:[%s3500_s4 + $0x330] sm:$0xff]  ;;  %v451_v38 = vld [vmem:[%s3500_s4 + $0x408] sm:$0xff] }
 0x109   :  { %799 = vmatprep.mubr.f32.mxu1 %v270_v2  ;;  %v2702_v16 = vadd.f32 %v2597_v5, %v307_v62  ;;  %v2714_v24 = vadd.f32 %v2597_v5, %v313_v63  ;;  %v443_v62 = vld [vmem:[%s3500_s4 + $0x3c8] sm:$0xff]  ;;  %v414_v63 = vld [vmem:[%s3500_s4 + $0x2e0] sm:$0xff]  ;;  %v272_v35 = vadd.f32 %v2597_v5, %v2678_v61  ;;  %v449_v61 = vld [vmem:[%s3500_s4 + $0x3f8] sm:$0xff] }
 0x10a   :  { %v248_v17 = vpop.f32.mrb[26].mxu1  ;;  %800 = vmatmul.mubr.f32.vlgmr.msra.gmra.mrb[28].mxu1 %v267_v7  ;;  %v2711_v23 = vadd.f32 %v2597_v5, %v298_v11  ;;  %v2033_v4 = vpack.c.bf16 %v443_v62, %v442_v58  ;;  %v426_v7 = vld [vmem:[%s3500_s4 + $0x340] sm:$0xff]  ;;  %v453_v62 = vld [vmem:[%s3500_s4 + $0x418] sm:$0xff] }
 0x10b   :  { %2020 = vmatpush3.bf16.msra.mxu1 %v2019_v52  ;;  %939 = vmatprep.mubr.f32.mxu1 %v282_v12  ;;  %v274_v25 = vadd.f32 %v248_v17, %v2581_v49  ;;  %v1885_v26 = vpop.f32.mrb[27].mxu1  ;;  %v289_v27 = vadd.f32 %v248_v17, %v2583_v51  ;;  %v310_v28 = vadd.f32 %v248_v17, %v2587_v55  ;;  %v423_v49 = vld [vmem:[%s3500_s4 + $0x328] sm:$0xff] }
 0x10c   :  { %1996 = vmatpush3.bf16.msra.mxu0 %v1995_v50  ;;  %2022 = vmatprep.subr.bf16.mxu1 %v2021_v9  ;;  %v301_v32 = vadd.f32 %v248_v17, %v2585_v53  ;;  %v316_v51 = vadd.f32 %v248_v17, %v2589_v57  ;;  %v2001_v55 = vpack.c.bf16 %v411_v22, %v410_v21  ;;  %v425_v50 = vld [vmem:[%s3500_s4 + $0x338] sm:$0xff]  ;;  %v427_v9 = vld [vmem:[%s3500_s4 + $0x348] sm:$0xff]  ;;  %v400_v22 = vld [vmem:[%s3500_s4 + $0x270] sm:$0xff] }
 0x10d   :  { %1998 = vmatprep.subr.bf16.mxu0 %v1997_v13  ;;  %v275_v33 = vadd.f32 %v2597_v5, %v274_v25  ;;  %v2741_v53 = vadd.f32 %v2597_v5, %v289_v27  ;;  %v2744_v57 = vadd.f32 %v2597_v5, %v310_v28  ;;  %v2027_v44 = vpack.c.bf16 %v423_v49, %v422_v31  ;;  %v399_v12 = vld [vmem:[%s3500_s4 + $0x268] sm:$0xff]  ;;  %v444_v13 = vld [vmem:[%s3500_s4 + $0x3d0] sm:$0xff]  ;;  %v429_v26 = vld [vmem:[%s3500_s4 + $0x358] sm:$0xff] }
 0x10e   :  { %v2753_v39 = vadd.f32 %v2597_v5, %v301_v32  ;;  %v2756_v40 = vadd.f32 %v2597_v5, %v316_v51  ;;  %v319_v52 = vadd.f32 %v248_v17, %v2591_v59  ;;  %v415_v59 = vld [vmem:[%s3500_s4 + $0x2e8] sm:$0xff]  ;;  %v2031_v2 = vpack.c.bf16 %v425_v50, %v424_v48  ;;  %v417_v17 = vld [vmem:[%s3500_s4 + $0x2f8] sm:$0xff]  ;;  %v428_v25 = vld [vmem:[%s3500_s4 + $0x350] sm:$0xff] }
 0x10f   :  { %2024 = vmatpush3.bf16.msra.mxu1 %v2023_v20  ;;  %v276_v41 = vmax.f32 %v275_v33, 0.0  ;;  %v2009_v11 = vpack.c.bf16 %v415_v59, %v414_v63  ;;  %v2011_v20 = vpack.c.bf16 %v399_v12, %v398_v6  ;;  %v2037_v21 = vpack.c.bf16 %v445_v14, %v444_v13  ;;  %v401_v28 = vld [vmem:[%s3500_s4 + $0x278] sm:$0xff]  ;;  %v466_v31 = vld [vmem:[%s3500_s4 + $0x480] sm:$0xff]  ;;  %v467_v49 = vld [vmem:[%s3500_s4 + $0x488] sm:$0xff] }
 0x110   :  { %2000 = vmatpush3.bf16.msra.mxu0 %v1999_v18  ;;  %2026 = vmatprep.subr.bf16.mxu1 %v2025_v29  ;;  %v2784_v1 = vadd.f32 %v2597_v5, %v319_v52  ;;  %v2035_v18 = vpack.c.bf16 %v427_v9, %v426_v7  ;;  %v2013_v27 = vpack.c.bf16 %v417_v17, %v416_v15  ;;  %v446_v29 = vld [vmem:[%s3500_s4 + $0x3e0] sm:$0xff]  ;;  %v433_v50 = vld [vmem:[%s3500_s4 + $0x378] sm:$0xff]  ;;  %v452_v52 = vld [vmem:[%s3500_s4 + $0x410] sm:$0xff] }
 0x111   :  { %2002 = vmatprep.subr.bf16.mxu0 %v2001_v55  ;;  %869 = vmatprep.mubr.f32.mxu0 %v276_v41  ;;  %v2039_v32 = vpack.c.bf16 %v429_v26, %v428_v25  ;;  %v2015_v51 = vpack.c.bf16 %v401_v28, %v400_v22  ;;  %v2041_v55 = vpack.c.bf16 %v447_v30, %v446_v29  ;;  %v430_v33 = vld [vmem:[%s3500_s4 + $0x360] sm:$0xff]  ;;  %v448_v41 = vld [vmem:[%s3500_s4 + $0x3f0] sm:$0xff]  ;;  %v499_v59 = vld [vmem:[%s3500_s4 + $0x588] sm:$0xff] }
 0x112   :  { %v2049_v36 = vpack.c.bf16 %v467_v49, %v466_v31  ;;  %v2043_v47 = vpack.c.bf16 %v431_v34, %v430_v33  ;;  %v2051_v48 = vpack.c.bf16 %v451_v38, %v450_v37  ;;  %v2045_v56 = vpack.c.bf16 %v449_v61, %v448_v41  ;;  %v498_v63 = vld [vmem:[%s3500_s4 + $0x580] sm:$0xff]  ;;  %v483_v14 = vld [vmem:[%s3500_s4 + $0x508] sm:$0xff]  ;;  %v473_v22 = vld [vmem:[%s3500_s4 + $0x4b8] sm:$0xff] }
 0x113   :  { %2028 = vmatpush3.bf16.msra.mxu1 %v2027_v44  ;;  %v287_v44 = vadd.f32 %v2597_v5, %v2692_v10  ;;  %v432_v10 = vld [vmem:[%s3500_s4 + $0x370] sm:$0xff]  ;;  %v278_v7 = vadd.f32 %v2597_v5, %v2601_v8  ;;  %v2055_v9 = vpack.c.bf16 %v453_v62, %v452_v52  ;;  %v454_v12 = vld [vmem:[%s3500_s4 + $0x420] sm:$0xff]  ;;  %v455_v8 = vld [vmem:[%s3500_s4 + $0x428] sm:$0xff]  ;;  %v293_v17 = vadd.f32 %v2597_v5, %v2620_v19 }
 0x114   :  { %2004 = vmatpush3.bf16.msra.mxu0 %v2003_v45  ;;  %2030 = vmatprep.subr.bf16.mxu1 %v2029_v46  ;;  %v468_v45 = vld [vmem:[%s3500_s4 + $0x490] sm:$0xff]  ;;  %v469_v46 = vld [vmem:[%s3500_s4 + $0x498] sm:$0xff]  ;;  %v2047_v6 = vpack.c.bf16 %v433_v50, %v432_v10  ;;  %v482_v13 = vld [vmem:[%s3500_s4 + $0x500] sm:$0xff]  ;;  %v2059_v5 = vpack.c.bf16 %v455_v8, %v454_v12 }
 0x115   :  { %2006 = vmatprep.subr.bf16.mxu0 %v2005_v54  ;;  %v273_v54 = vmax.f32 %v272_v35, 0.0  ;;  %v2053_v58 = vpack.c.bf16 %v469_v46, %v468_v45  ;;  %v2083_v25 = vpack.c.bf16 %v483_v14, %v482_v13  ;;  %v279_v26 = vmax.f32 %v278_v7, 0.0  ;;  %v484_v28 = vld [vmem:[%s3500_s4 + $0x510] sm:$0xff]  ;;  %v485_v29 = vld [vmem:[%s3500_s4 + $0x518] sm:$0xff]  ;;  %v475_v33 = vld [vmem:[%s3500_s4 + $0x4c8] sm:$0xff] }
 0x116   :  { %v294_v30 = vmax.f32 %v293_v17, 0.0  ;;  %v457_v49 = vld [vmem:[%s3500_s4 + $0x438] sm:$0xff]  ;;  %v2087_v34 = vpack.c.bf16 %v485_v29, %v484_v28  ;;  %v458_v37 = vld [vmem:[%s3500_s4 + $0x440] sm:$0xff]  ;;  %v487_v41 = vld [vmem:[%s3500_s4 + $0x528] sm:$0xff] }
 0x117   :  { %2032 = vmatpush3.bf16.msra.mxu1 %v2031_v2  ;;  %v288_v2 = vmax.f32 %v287_v44, 0.0  ;;  %v486_v38 = vld [vmem:[%s3500_s4 + $0x520] sm:$0xff]  ;;  %v459_v61 = vld [vmem:[%s3500_s4 + $0x448] sm:$0xff]  ;;  %v504_v45 = vld [vmem:[%s3500_s4 + $0x5b0] sm:$0xff] }
 0x118   :  { %2008 = vmatpush3.bf16.msra.mxu0 %v2007_v3  ;;  %2034 = vmatprep.subr.bf16.mxu1 %v2033_v4  ;;  %v470_v3 = vld [vmem:[%s3500_s4 + $0x4a0] sm:$0xff]  ;;  %v471_v4 = vld [vmem:[%s3500_s4 + $0x4a8] sm:$0xff]  ;;  %v505_v46 = vld [vmem:[%s3500_s4 + $0x5b8] sm:$0xff]  ;;  %v2091_v10 = vpack.c.bf16 %v487_v41, %v486_v38  ;;  %v2067_v50 = vpack.c.bf16 %v459_v61, %v458_v37 }
 0x119   :  { %2010 = vmatprep.subr.bf16.mxu0 %v2009_v11  ;;  %v2081_v11 = vpack.c.bf16 %v499_v59, %v498_v63  ;;  %v2057_v15 = vpack.c.bf16 %v471_v4, %v470_v3  ;;  %v2093_v52 = vpack.c.bf16 %v505_v46, %v504_v45  ;;  %v461_v63 = vld [vmem:[%s3500_s4 + $0x458] sm:$0xff]  ;;  %v506_v59 = vld [vmem:[%s3500_s4 + $0x5c0] sm:$0xff]  ;;  %v479_v4 = vld [vmem:[%s3500_s4 + $0x4e8] sm:$0xff] }
 0x11a   :  { %v478_v3 = vld [vmem:[%s3500_s4 + $0x4e0] sm:$0xff]  ;;  %v491_v13 = vld [vmem:[%s3500_s4 + $0x548] sm:$0xff]  ;;  %v508_v8 = vld [vmem:[%s3500_s4 + $0x5d0] sm:$0xff] }
 0x11b   :  { %2036 = vmatpush3.bf16.msra.mxu1 %v2035_v18  ;;  %v500_v18 = vld [vmem:[%s3500_s4 + $0x590] sm:$0xff]  ;;  %v490_v12 = vld [vmem:[%s3500_s4 + $0x540] sm:$0xff]  ;;  %v2073_v14 = vpack.c.bf16 %v479_v4, %v478_v3  ;;  %v509_v17 = vld [vmem:[%s3500_s4 + $0x5d8] sm:$0xff] }
 0x11c   :  { %2012 = vmatpush3.bf16.msra.mxu0 %v2011_v20  ;;  %2038 = vmatprep.subr.bf16.mxu1 %v2037_v21  ;;  %v501_v20 = vld [vmem:[%s3500_s4 + $0x598] sm:$0xff]  ;;  %v472_v21 = vld [vmem:[%s3500_s4 + $0x4b0] sm:$0xff]  ;;  %v510_v29 = vld [vmem:[%s3500_s4 + $0x5e0] sm:$0xff] }
 0x11d   :  { %2014 = vmatprep.subr.bf16.mxu0 %v2013_v27  ;;  %v2085_v19 = vpack.c.bf16 %v501_v20, %v500_v18  ;;  %v456_v27 = vld [vmem:[%s3500_s4 + $0x430] sm:$0xff]  ;;  %v2061_v31 = vpack.c.bf16 %v473_v22, %v472_v21  ;;  %v481_v20 = vld [vmem:[%s3500_s4 + $0x4f8] sm:$0xff]  ;;  %v2099_v21 = vpack.c.bf16 %v491_v13, %v490_v12  ;;  %v515_v37 = vld [vmem:[%s3500_s4 + $0x608] sm:$0xff] }
 0x11e   :  { %v2063_v35 = vpack.c.bf16 %v457_v49, %v456_v27  ;;  %v480_v18 = vld [vmem:[%s3500_s4 + $0x4f0] sm:$0xff]  ;;  %v465_v28 = vld [vmem:[%s3500_s4 + $0x478] sm:$0xff]  ;;  %v531_v49 = vld [vmem:[%s3500_s4 + $0x688] sm:$0xff] }
 0x11f   :  { %2040 = vmatpush3.bf16.msra.mxu1 %v2039_v32  ;;  %v502_v32 = vld [vmem:[%s3500_s4 + $0x5a0] sm:$0xff]  ;;  %v2077_v27 = vpack.c.bf16 %v481_v20, %v480_v18  ;;  %v512_v38 = vld [vmem:[%s3500_s4 + $0x5f0] sm:$0xff]  ;;  %v513_v41 = vld [vmem:[%s3500_s4 + $0x5f8] sm:$0xff] }
 0x120   :  { %2016 = vmatpush3.bf16.msra.mxu0 %v2015_v51  ;;  %2042 = vmatprep.subr.bf16.mxu1 %v2041_v55  ;;  %v503_v51 = vld [vmem:[%s3500_s4 + $0x5a8] sm:$0xff]  ;;  %v474_v55 = vld [vmem:[%s3500_s4 + $0x4c0] sm:$0xff]  ;;  %v533_v61 = vld [vmem:[%s3500_s4 + $0x698] sm:$0xff] }
 0x121   :  { %2050 = vmatprep.subr.bf16.mxu0 %v2049_v36  ;;  %v2089_v36 = vpack.c.bf16 %v503_v51, %v502_v32  ;;  %v2065_v44 = vpack.c.bf16 %v475_v33, %v474_v55  ;;  %v494_v33 = vld [vmem:[%s3500_s4 + $0x560] sm:$0xff]  ;;  %v564_v12 = vld [vmem:[%s3500_s4 + $0x790] sm:$0xff]  ;;  %v565_v13 = vld [vmem:[%s3500_s4 + $0x798] sm:$0xff] }
 0x122   :  { %v2149_v20 = vpack.c.bf16 %v565_v13, %v564_v12  ;;  %v528_v13 = vld [vmem:[%s3500_s4 + $0x670] sm:$0xff] }
 0x123   :  { %870 = vmatmul.mubr.f32.vlgmr.msra.gmra.mrb[2].mxu0 %v273_v54  ;;  %2044 = vmatpush3.bf16.msra.mxu1 %v2043_v47  ;;  %v476_v47 = vld [vmem:[%s3500_s4 + $0x4d0] sm:$0xff] }
 0x124   :  { %2052 = vmatpush3.bf16.msra.mxu0 %v2051_v48  ;;  %1009 = vmatprep.mubr.f32.mxu0 %v288_v2  ;;  %v477_v48 = vld [vmem:[%s3500_s4 + $0x4d8] sm:$0xff]  ;;  %v460_v54 = vld [vmem:[%s3500_s4 + $0x450] sm:$0xff]  ;;  %v507_v2 = vld [vmem:[%s3500_s4 + $0x5c8] sm:$0xff] }
 0x125   :  { %2046 = vmatprep.subr.bf16.mxu1 %v2045_v56  ;;  %2054 = vmatprep.subr.bf16.mxu0 %v2053_v58  ;;  %v488_v56 = vld [vmem:[%s3500_s4 + $0x530] sm:$0xff]  ;;  %v489_v58 = vld [vmem:[%s3500_s4 + $0x538] sm:$0xff]  ;;  %v2069_v62 = vpack.c.bf16 %v477_v48, %v476_v47  ;;  %v2071_v7 = vpack.c.bf16 %v461_v63, %v460_v54  ;;  %v300_v63 = vmax.f32 %v2711_v23, 0.0  ;;  %v546_v23 = vld [vmem:[%s3500_s4 + $0x700] sm:$0xff] }
 0x126   :  { %v496_v47 = vld [vmem:[%s3500_s4 + $0x570] sm:$0xff]  ;;  %v497_v48 = vld [vmem:[%s3500_s4 + $0x578] sm:$0xff] }
 0x127   :  { %2048 = vmatpush3.bf16.msra.mxu1 %v2047_v6  ;;  %v2095_v6 = vpack.c.bf16 %v489_v58, %v488_v56  ;;  %v517_v56 = vld [vmem:[%s3500_s4 + $0x618] sm:$0xff]  ;;  %v562_v58 = vld [vmem:[%s3500_s4 + $0x780] sm:$0xff] }
 0x128   :  { %2056 = vmatpush3.bf16.msra.mxu0 %v2055_v9  ;;  %2082 = vmatprep.subr.bf16.mxu1 %v2081_v11  ;;  %v2097_v9 = vpack.c.bf16 %v507_v2, %v506_v59  ;;  %v462_v11 = vld [vmem:[%s3500_s4 + $0x460] sm:$0xff]  ;;  %v535_v59 = vld [vmem:[%s3500_s4 + $0x6a8] sm:$0xff]  ;;  %v2111_v2 = vpack.c.bf16 %v497_v48, %v496_v47  ;;  %v525_v48 = vld [vmem:[%s3500_s4 + $0x658] sm:$0xff] }
 0x129   :  { %2058 = vmatprep.subr.bf16.mxu0 %v2057_v15  ;;  %v463_v15 = vld [vmem:[%s3500_s4 + $0x468] sm:$0xff] }
 0x12a   :  { %940 = vmatmul.mubr.f32.vlgmr.msra.gmra.mrb[30].mxu1 %v279_v26  ;;  %v2075_v22 = vpack.c.bf16 %v463_v15, %v462_v11  ;;  %v464_v26 = vld [vmem:[%s3500_s4 + $0x470] sm:$0xff]  ;;  %v519_v11 = vld [vmem:[%s3500_s4 + $0x628] sm:$0xff]  ;;  %v537_v15 = vld [vmem:[%s3500_s4 + $0x6b8] sm:$0xff] }
 0x12b   :  { %2084 = vmatpush3.bf16.msra.mxu1 %v2083_v25  ;;  %1079 = vmatprep.mubr.f32.mxu1 %v294_v30  ;;  %v2101_v25 = vpack.c.bf16 %v509_v17, %v508_v8  ;;  %v511_v30 = vld [vmem:[%s3500_s4 + $0x5e8] sm:$0xff]  ;;  %v2079_v51 = vpack.c.bf16 %v465_v28, %v464_v26  ;;  %v291_v17 = vmax.f32 %v2741_v53, 0.0  ;;  %v306_v26 = vmax.f32 %v2675_v60, 0.0  ;;  %v521_v53 = vld [vmem:[%s3500_s4 + $0x638] sm:$0xff]  ;;  %v538_v28 = vld [vmem:[%s3500_s4 + $0x6c0] sm:$0xff] }
 0x12c   :  { %2060 = vmatpush3.bf16.msra.mxu0 %v2059_v5  ;;  %2086 = vmatprep.subr.bf16.mxu1 %v2085_v19  ;;  %v492_v5 = vld [vmem:[%s3500_s4 + $0x550] sm:$0xff]  ;;  %v493_v19 = vld [vmem:[%s3500_s4 + $0x558] sm:$0xff]  ;;  %v2105_v55 = vpack.c.bf16 %v511_v30, %v510_v29  ;;  %v539_v60 = vld [vmem:[%s3500_s4 + $0x6c8] sm:$0xff] }
 0x12d   :  { %2062 = vmatprep.subr.bf16.mxu0 %v2061_v31  ;;  %v530_v31 = vld [vmem:[%s3500_s4 + $0x680] sm:$0xff]  ;;  %v2103_v32 = vpack.c.bf16 %v493_v19, %v492_v5 }
 0x12e   :  { %v566_v19 = vld [vmem:[%s3500_s4 + $0x7a0] sm:$0xff] }
 0x12f   :  { %2088 = vmatpush3.bf16.msra.mxu1 %v2087_v34  ;;  %v495_v34 = vld [vmem:[%s3500_s4 + $0x568] sm:$0xff] }
 0x130   :  { %2064 = vmatpush3.bf16.msra.mxu0 %v2063_v35  ;;  %2090 = vmatprep.subr.bf16.mxu1 %v2089_v36  ;;  %v2113_v35 = vpack.c.bf16 %v531_v49, %v530_v31  ;;  %v514_v36 = vld [vmem:[%s3500_s4 + $0x600] sm:$0xff]  ;;  %v2107_v45 = vpack.c.bf16 %v495_v34, %v494_v33  ;;  %v523_v33 = vld [vmem:[%s3500_s4 + $0x648] sm:$0xff]  ;;  %v568_v34 = vld [vmem:[%s3500_s4 + $0x7b0] sm:$0xff] }
 0x131   :  { %2066 = vmatprep.subr.bf16.mxu0 %v2065_v44  ;;  %v532_v44 = vld [vmem:[%s3500_s4 + $0x690] sm:$0xff]  ;;  %v2115_v46 = vpack.c.bf16 %v515_v37, %v514_v36  ;;  %v522_v49 = vld [vmem:[%s3500_s4 + $0x640] sm:$0xff]  ;;  %v541_v37 = vld [vmem:[%s3500_s4 + $0x6d8] sm:$0xff] }
 0x132   :  { %v2117_v54 = vpack.c.bf16 %v533_v61, %v532_v44  ;;  %v540_v36 = vld [vmem:[%s3500_s4 + $0x6d0] sm:$0xff] }
 0x133   :  { %2092 = vmatpush3.bf16.msra.mxu1 %v2091_v10  ;;  %v516_v10 = vld [vmem:[%s3500_s4 + $0x610] sm:$0xff]  ;;  %v2133_v47 = vpack.c.bf16 %v541_v37, %v540_v36 }
 0x134   :  { %2068 = vmatpush3.bf16.msra.mxu0 %v2067_v50  ;;  %2094 = vmatprep.subr.bf16.mxu1 %v2093_v52  ;;  %v285_v50 = vmax.f32 %v2652_v42, 0.0  ;;  %v2109_v52 = vpack.c.bf16 %v513_v41, %v512_v38  ;;  %v534_v42 = vld [vmem:[%s3500_s4 + $0x6a0] sm:$0xff]  ;;  %v2119_v3 = vpack.c.bf16 %v517_v56, %v516_v10  ;;  %v2131_v41 = vpack.c.bf16 %v523_v33, %v522_v49  ;;  %v524_v61 = vld [vmem:[%s3500_s4 + $0x650] sm:$0xff]  ;;  %v597_v49 = vld [vmem:[%s3500_s4 + $0x898] sm:$0xff] }
 0x135   :  { %2070 = vmatprep.subr.bf16.mxu0 %v2069_v62  ;;  %v563_v62 = vld [vmem:[%s3500_s4 + $0x788] sm:$0xff]  ;;  %v570_v10 = vld [vmem:[%s3500_s4 + $0x7c0] sm:$0xff]  ;;  %v561_v33 = vld [vmem:[%s3500_s4 + $0x778] sm:$0xff] }
 0x136   :  { %v2145_v4 = vpack.c.bf16 %v563_v62, %v562_v58  ;;  %v2135_v58 = vpack.c.bf16 %v525_v48, %v524_v61  ;;  %v312_v61 = vmax.f32 %v2744_v57, 0.0  ;;  %v610_v57 = vld [vmem:[%s3500_s4 + $0x900] sm:$0xff] }
 0x137   :  { %2096 = vmatpush3.bf16.msra.mxu1 %v2095_v6  ;;  %v518_v6 = vld [vmem:[%s3500_s4 + $0x620] sm:$0xff] }
 0x138   :  { %2072 = vmatpush3.bf16.msra.mxu0 %v2071_v7  ;;  %2098 = vmatprep.subr.bf16.mxu1 %v2097_v9  ;;  %v547_v7 = vld [vmem:[%s3500_s4 + $0x708] sm:$0xff]  ;;  %v2121_v9 = vpack.c.bf16 %v535_v59, %v534_v42  ;;  %v2123_v18 = vpack.c.bf16 %v519_v11, %v518_v6  ;;  %v554_v42 = vld [vmem:[%s3500_s4 + $0x740] sm:$0xff]  ;;  %v573_v6 = vld [vmem:[%s3500_s4 + $0x7d8] sm:$0xff] }
 0x139   :  { %2074 = vmatprep.subr.bf16.mxu0 %v2073_v14  ;;  %v536_v14 = vld [vmem:[%s3500_s4 + $0x6b0] sm:$0xff]  ;;  %v2147_v8 = vpack.c.bf16 %v547_v7, %v546_v23  ;;  %v555_v59 = vld [vmem:[%s3500_s4 + $0x748] sm:$0xff]  ;;  %v545_v7 = vld [vmem:[%s3500_s4 + $0x6f8] sm:$0xff] }
 0x13a   :  { %v2125_v5 = vpack.c.bf16 %v537_v15, %v536_v14  ;;  %v544_v23 = vld [vmem:[%s3500_s4 + $0x6f0] sm:$0xff]  ;;  %v557_v15 = vld [vmem:[%s3500_s4 + $0x758] sm:$0xff] }
 0x13b   :  { %2100 = vmatpush3.bf16.msra.mxu1 %v2099_v21  ;;  %v520_v21 = vld [vmem:[%s3500_s4 + $0x630] sm:$0xff] }
 0x13c   :  { %2076 = vmatpush3.bf16.msra.mxu0 %v2075_v22  ;;  %2102 = vmatprep.subr.bf16.mxu1 %v2101_v25  ;;  %v548_v22 = vld [vmem:[%s3500_s4 + $0x710] sm:$0xff]  ;;  %v549_v25 = vld [vmem:[%s3500_s4 + $0x718] sm:$0xff]  ;;  %v2127_v30 = vpack.c.bf16 %v521_v53, %v520_v21  ;;  %v594_v21 = vld [vmem:[%s3500_s4 + $0x880] sm:$0xff] }
 0x13d   :  { %2078 = vmatprep.subr.bf16.mxu0 %v2077_v27  ;;  %v567_v27 = vld [vmem:[%s3500_s4 + $0x7a8] sm:$0xff]  ;;  %v2151_v29 = vpack.c.bf16 %v549_v25, %v548_v22  ;;  %v556_v14 = vld [vmem:[%s3500_s4 + $0x750] sm:$0xff]  ;;  %v558_v53 = vld [vmem:[%s3500_s4 + $0x760] sm:$0xff] }
 0x13e   :  { %v2153_v31 = vpack.c.bf16 %v567_v27, %v566_v19  ;;  %v595_v22 = vld [vmem:[%s3500_s4 + $0x888] sm:$0xff]  ;;  %v2167_v25 = vpack.c.bf16 %v557_v15, %v556_v14 }
 0x13f   :  { %2104 = vmatpush3.bf16.msra.mxu1 %v2103_v32  ;;  %v550_v32 = vld [vmem:[%s3500_s4 + $0x720] sm:$0xff]  ;;  %v559_v19 = vld [vmem:[%s3500_s4 + $0x768] sm:$0xff]  ;;  %v2177_v27 = vpack.c.bf16 %v595_v22, %v594_v21 }
 0x140   :  { %2080 = vmatpush3.bf16.msra.mxu0 %v2079_v51  ;;  %2106 = vmatprep.subr.bf16.mxu1 %v2105_v55  ;;  %v551_v51 = vld [vmem:[%s3500_s4 + $0x728] sm:$0xff]  ;;  %v2129_v55 = vpack.c.bf16 %v539_v60, %v538_v28  ;;  %v578_v28 = vld [vmem:[%s3500_s4 + $0x800] sm:$0xff] }
 0x141   :  { %2114 = vmatprep.subr.bf16.mxu0 %v2113_v35  ;;  %v569_v35 = vld [vmem:[%s3500_s4 + $0x7b8] sm:$0xff]  ;;  %v2155_v38 = vpack.c.bf16 %v551_v51, %v550_v32  ;;  %v579_v60 = vld [vmem:[%s3500_s4 + $0x808] sm:$0xff]  ;;  %v2171_v32 = vpack.c.bf16 %v559_v19, %v558_v53 }
 0x142   :  { %v2157_v44 = vpack.c.bf16 %v569_v35, %v568_v34  ;;  %v2179_v51 = vpack.c.bf16 %v579_v60, %v578_v28  ;;  %v580_v34 = vld [vmem:[%s3500_s4 + $0x810] sm:$0xff]  ;;  %v297_v35 = vmax.f32 %v2655_v43, 0.0  ;;  %v598_v43 = vld [vmem:[%s3500_s4 + $0x8a0] sm:$0xff]  ;;  %v587_v22 = vld [vmem:[%s3500_s4 + $0x848] sm:$0xff] }
 0x143   :  { %1010 = vmatmul.mubr.f32.vlgmr.msra.gmra.mrb[4].mxu0 %v285_v50  ;;  %2108 = vmatpush3.bf16.msra.mxu1 %v2107_v45  ;;  %v552_v45 = vld [vmem:[%s3500_s4 + $0x730] sm:$0xff]  ;;  %v571_v50 = vld [vmem:[%s3500_s4 + $0x7c8] sm:$0xff]  ;;  %v605_v53 = vld [vmem:[%s3500_s4 + $0x8d8] sm:$0xff] }
 0x144   :  { %2116 = vmatpush3.bf16.msra.mxu0 %v2115_v46  ;;  %1149 = vmatprep.mubr.f32.mxu0 %v300_v63  ;;  %v553_v46 = vld [vmem:[%s3500_s4 + $0x738] sm:$0xff]  ;;  %v2161_v62 = vpack.c.bf16 %v571_v50, %v570_v10  ;;  %v526_v63 = vld [vmem:[%s3500_s4 + $0x660] sm:$0xff]  ;;  %v611_v50 = vld [vmem:[%s3500_s4 + $0x908] sm:$0xff] }
 0x145   :  { %2110 = vmatprep.subr.bf16.mxu1 %v2109_v52  ;;  %2118 = vmatprep.subr.bf16.mxu0 %v2117_v54  ;;  %v542_v52 = vld [vmem:[%s3500_s4 + $0x6e0] sm:$0xff]  ;;  %v543_v54 = vld [vmem:[%s3500_s4 + $0x6e8] sm:$0xff]  ;;  %v2159_v56 = vpack.c.bf16 %v553_v46, %v552_v45  ;;  %v588_v60 = vld [vmem:[%s3500_s4 + $0x850] sm:$0xff] }
 0x146   :  { %v599_v45 = vld [vmem:[%s3500_s4 + $0x8a8] sm:$0xff]  ;;  %v582_v10 = vld [vmem:[%s3500_s4 + $0x820] sm:$0xff] }
 0x147   :  { %2112 = vmatpush3.bf16.msra.mxu1 %v2111_v2  ;;  %v2137_v2 = vpack.c.bf16 %v543_v54, %v542_v52  ;;  %v2185_v52 = vpack.c.bf16 %v599_v45, %v598_v43  ;;  %v583_v54 = vld [vmem:[%s3500_s4 + $0x828] sm:$0xff]  ;;  %v636_v43 = vld [vmem:[%s3500_s4 + $0x9d0] sm:$0xff]  ;;  %v637_v45 = vld [vmem:[%s3500_s4 + $0x9d8] sm:$0xff] }
 0x148   :  { %2120 = vmatpush3.bf16.msra.mxu0 %v2119_v3  ;;  %2146 = vmatprep.subr.bf16.mxu1 %v2145_v4  ;;  %v527_v3 = vld [vmem:[%s3500_s4 + $0x668] sm:$0xff]  ;;  %v572_v4 = vld [vmem:[%s3500_s4 + $0x7d0] sm:$0xff] }
 0x149   :  { %2122 = vmatprep.subr.bf16.mxu0 %v2121_v9  ;;  %v2163_v9 = vpack.c.bf16 %v555_v59, %v554_v42  ;;  %v2139_v11 = vpack.c.bf16 %v527_v3, %v526_v63  ;;  %v2165_v12 = vpack.c.bf16 %v573_v6, %v572_v4  ;;  %v601_v63 = vld [vmem:[%s3500_s4 + $0x8b8] sm:$0xff]  ;;  %v2211_v42 = vpack.c.bf16 %v611_v50, %v610_v57  ;;  %v584_v4 = vld [vmem:[%s3500_s4 + $0x830] sm:$0xff] }
 0x14a   :  { %1080 = vmatmul.mubr.f32.vlgmr.msra.gmra.mrb[32].mxu1 %v291_v17  ;;  %v529_v17 = vld [vmem:[%s3500_s4 + $0x678] sm:$0xff]  ;;  %v303_v59 = vmax.f32 %v2753_v39, 0.0  ;;  %v612_v6 = vld [vmem:[%s3500_s4 + $0x910] sm:$0xff]  ;;  %v2229_v57 = vpack.c.bf16 %v637_v45, %v636_v43 }
 0x14b   :  { %2148 = vmatpush3.bf16.msra.mxu1 %v2147_v8  ;;  %1219 = vmatprep.mubr.f32.mxu1 %v306_v26  ;;  %v2141_v8 = vpack.c.bf16 %v545_v7, %v544_v23  ;;  %v2143_v26 = vpack.c.bf16 %v529_v17, %v528_v13  ;;  %v613_v23 = vld [vmem:[%s3500_s4 + $0x918] sm:$0xff]  ;;  %v318_v7 = vmax.f32 %v2756_v40, 0.0  ;;  %v602_v13 = vld [vmem:[%s3500_s4 + $0x8c0] sm:$0xff]  ;;  %v603_v40 = vld [vmem:[%s3500_s4 + $0x8c8] sm:$0xff] }
 0x14c   :  { %2124 = vmatpush3.bf16.msra.mxu0 %v2123_v18  ;;  %2150 = vmatprep.subr.bf16.mxu1 %v2149_v20  ;;  %v574_v18 = vld [vmem:[%s3500_s4 + $0x7e0] sm:$0xff]  ;;  %v575_v20 = vld [vmem:[%s3500_s4 + $0x7e8] sm:$0xff]  ;;  %v585_v39 = vld [vmem:[%s3500_s4 + $0x838] sm:$0xff]  ;;  %v2215_v14 = vpack.c.bf16 %v613_v23, %v612_v6  ;;  %v2193_v21 = vpack.c.bf16 %v603_v40, %v602_v13 }
 0x14d   :  { %2126 = vmatprep.subr.bf16.mxu0 %v2125_v5  ;;  %v2169_v5 = vpack.c.bf16 %v575_v20, %v574_v18  ;;  %v2191_v15 = vpack.c.bf16 %v585_v39, %v584_v4  ;;  %v586_v17 = vld [vmem:[%s3500_s4 + $0x840] sm:$0xff]  ;;  %v615_v20 = vld [vmem:[%s3500_s4 + $0x928] sm:$0xff]  ;;  %v592_v50 = vld [vmem:[%s3500_s4 + $0x870] sm:$0xff] }
 0x14e   :  { %v614_v18 = vld [vmem:[%s3500_s4 + $0x920] sm:$0xff]  ;;  %v623_v4 = vld [vmem:[%s3500_s4 + $0x968] sm:$0xff]  ;;  %v624_v13 = vld [vmem:[%s3500_s4 + $0x970] sm:$0xff] }
 0x14f   :  { %2152 = vmatpush3.bf16.msra.mxu1 %v2151_v29  ;;  %v576_v29 = vld [vmem:[%s3500_s4 + $0x7f0] sm:$0xff]  ;;  %v2219_v19 = vpack.c.bf16 %v615_v20, %v614_v18  ;;  %v642_v6 = vld [vmem:[%s3500_s4 + $0xa00] sm:$0xff]  ;;  %v643_v23 = vld [vmem:[%s3500_s4 + $0xa08] sm:$0xff] }
 0x150   :  { %2128 = vmatpush3.bf16.msra.mxu0 %v2127_v30  ;;  %2154 = vmatprep.subr.bf16.mxu1 %v2153_v31  ;;  %v577_v30 = vld [vmem:[%s3500_s4 + $0x7f8] sm:$0xff]  ;;  %v596_v31 = vld [vmem:[%s3500_s4 + $0x890] sm:$0xff] }
 0x151   :  { %2130 = vmatprep.subr.bf16.mxu0 %v2129_v55  ;;  %v560_v55 = vld [vmem:[%s3500_s4 + $0x770] sm:$0xff]  ;;  %v2173_v36 = vpack.c.bf16 %v577_v30, %v576_v29  ;;  %v2181_v37 = vpack.c.bf16 %v597_v49, %v596_v31  ;;  %v617_v30 = vld [vmem:[%s3500_s4 + $0x938] sm:$0xff] }
 0x152   :  { %v2175_v46 = vpack.c.bf16 %v561_v33, %v560_v55  ;;  %v616_v29 = vld [vmem:[%s3500_s4 + $0x930] sm:$0xff]  ;;  %v589_v49 = vld [vmem:[%s3500_s4 + $0x858] sm:$0xff]  ;;  %v606_v55 = vld [vmem:[%s3500_s4 + $0x8e0] sm:$0xff] }
 0x153   :  { %2156 = vmatpush3.bf16.msra.mxu1 %v2155_v38  ;;  %v581_v38 = vld [vmem:[%s3500_s4 + $0x818] sm:$0xff]  ;;  %v607_v33 = vld [vmem:[%s3500_s4 + $0x8e8] sm:$0xff] }
 0x154   :  { %2132 = vmatpush3.bf16.msra.mxu0 %v2131_v41  ;;  %2158 = vmatprep.subr.bf16.mxu1 %v2157_v44  ;;  %v626_v41 = vld [vmem:[%s3500_s4 + $0x980] sm:$0xff]  ;;  %v627_v44 = vld [vmem:[%s3500_s4 + $0x988] sm:$0xff]  ;;  %v625_v40 = vld [vmem:[%s3500_s4 + $0x978] sm:$0xff] }
 0x155   :  { %2134 = vmatprep.subr.bf16.mxu0 %v2133_v47  ;;  %v2183_v47 = vpack.c.bf16 %v581_v38, %v580_v34  ;;  %v2209_v48 = vpack.c.bf16 %v627_v44, %v626_v41  ;;  %v2223_v34 = vpack.c.bf16 %v617_v30, %v616_v29  ;;  %v618_v38 = vld [vmem:[%s3500_s4 + $0x940] sm:$0xff]  ;;  %v619_v41 = vld [vmem:[%s3500_s4 + $0x948] sm:$0xff]  ;;  %v2201_v44 = vpack.c.bf16 %v607_v33, %v606_v55 }
 0x156   :  { %v2239_v18 = vpack.c.bf16 %v625_v40, %v624_v13  ;;  %v654_v29 = vld [vmem:[%s3500_s4 + $0xa60] sm:$0xff]  ;;  %v655_v30 = vld [vmem:[%s3500_s4 + $0xa68] sm:$0xff]  ;;  %v321_v55 = vmax.f32 %v2784_v1, 0.0 }
 0x157   :  { %2160 = vmatpush3.bf16.msra.mxu1 %v2159_v56  ;;  %v628_v56 = vld [vmem:[%s3500_s4 + $0x990] sm:$0xff] }
 0x158   :  { %2136 = vmatpush3.bf16.msra.mxu0 %v2135_v58  ;;  %2162 = vmatprep.subr.bf16.mxu1 %v2161_v62  ;;  %v629_v58 = vld [vmem:[%s3500_s4 + $0x998] sm:$0xff]  ;;  %v600_v62 = vld [vmem:[%s3500_s4 + $0x8b0] sm:$0xff] }
 0x159   :  { %2138 = vmatprep.subr.bf16.mxu0 %v2137_v2  ;;  %v2187_v2 = vpack.c.bf16 %v583_v54, %v582_v10  ;;  %v2213_v3 = vpack.c.bf16 %v629_v58, %v628_v56  ;;  %v621_v54 = vld [vmem:[%s3500_s4 + $0x958] sm:$0xff] }
 0x15a   :  { %v593_v58 = vld [vmem:[%s3500_s4 + $0x878] sm:$0xff] }
 0x15b   :  { %2164 = vmatpush3.bf16.msra.mxu1 %v2163_v9  ;;  %v2189_v9 = vpack.c.bf16 %v601_v63, %v600_v62  ;;  %v638_v62 = vld [vmem:[%s3500_s4 + $0x9e0] sm:$0xff]  ;;  %v639_v63 = vld [vmem:[%s3500_s4 + $0x9e8] sm:$0xff] }
 0x15c   :  { %2140 = vmatpush3.bf16.msra.mxu0 %v2139_v11  ;;  %2166 = vmatprep.subr.bf16.mxu1 %v2165_v12  ;;  %v630_v11 = vld [vmem:[%s3500_s4 + $0x9a0] sm:$0xff]  ;;  %v631_v12 = vld [vmem:[%s3500_s4 + $0x9a8] sm:$0xff] }
 0x15d   :  { %2142 = vmatprep.subr.bf16.mxu0 %v2141_v8  ;;  %v2217_v8 = vpack.c.bf16 %v631_v12, %v630_v11  ;;  %v2242_v11 = vpack.c.bf16 %v643_v23, %v642_v6 }
 0x15f   :  { %2168 = vmatpush3.bf16.msra.mxu1 %v2167_v25  ;;  %v632_v25 = vld [vmem:[%s3500_s4 + $0x9b0] sm:$0xff] }
 0x160   :  { %2144 = vmatpush3.bf16.msra.mxu0 %v2143_v26  ;;  %2170 = vmatprep.subr.bf16.mxu1 %v2169_v5  ;;  %v633_v26 = vld [vmem:[%s3500_s4 + $0x9b8] sm:$0xff]  ;;  %v604_v5 = vld [vmem:[%s3500_s4 + $0x8d0] sm:$0xff] }
 0x161   :  { %2178 = vmatprep.subr.bf16.mxu0 %v2177_v27  ;;  %v2195_v27 = vpack.c.bf16 %v587_v22, %v586_v17  ;;  %v2221_v28 = vpack.c.bf16 %v633_v26, %v632_v25  ;;  %v2197_v31 = vpack.c.bf16 %v605_v53, %v604_v5  ;;  %v645_v17 = vld [vmem:[%s3500_s4 + $0xa18] sm:$0xff]  ;;  %v315_v22 = vmax.f32 %v2714_v24, 0.0  ;;  %v648_v26 = vld [vmem:[%s3500_s4 + $0xa30] sm:$0xff]  ;;  %v651_v24 = vld [vmem:[%s3500_s4 + $0xa48] sm:$0xff] }
 0x162   :  { %v649_v5 = vld [vmem:[%s3500_s4 + $0xa38] sm:$0xff] }
 0x163   :  { %1150 = vmatmul.mubr.f32.vlgmr.msra.gmra.mrb[6].mxu0 %v297_v35  ;;  %2172 = vmatpush3.bf16.msra.mxu1 %v2171_v32  ;;  %v634_v32 = vld [vmem:[%s3500_s4 + $0x9c0] sm:$0xff]  ;;  %v2199_v35 = vpack.c.bf16 %v589_v49, %v588_v60  ;;  %v2251_v53 = vpack.c.bf16 %v649_v5, %v648_v26  ;;  %v656_v49 = vld [vmem:[%s3500_s4 + $0xa70] sm:$0xff] }
 0x164   :  { %2180 = vmatpush3.bf16.msra.mxu0 %v2179_v51  ;;  %1289 = vmatprep.mubr.f32.mxu0 %v312_v61  ;;  %v635_v51 = vld [vmem:[%s3500_s4 + $0x9c8] sm:$0xff] }
 0x165   :  { %2174 = vmatprep.subr.bf16.mxu1 %v2173_v36  ;;  %2182 = vmatprep.subr.bf16.mxu0 %v2181_v37  ;;  %v2225_v36 = vpack.c.bf16 %v635_v51, %v634_v32  ;;  %v590_v37 = vld [vmem:[%s3500_s4 + $0x860] sm:$0xff]  ;;  %v591_v61 = vld [vmem:[%s3500_s4 + $0x868] sm:$0xff]  ;;  %v657_v32 = vld [vmem:[%s3500_s4 + $0xa78] sm:$0xff] }
 0x166   :  { %v2203_v10 = vpack.c.bf16 %v591_v61, %v590_v37  ;;  %v2263_v51 = vpack.c.bf16 %v657_v32, %v656_v49 }
 0x167   :  { %2176 = vmatpush3.bf16.msra.mxu1 %v2175_v46  ;;  %v608_v46 = vld [vmem:[%s3500_s4 + $0x8f0] sm:$0xff] }
 0x168   :  { %2184 = vmatpush3.bf16.msra.mxu0 %v2183_v47  ;;  %2210 = vmatprep.subr.bf16.mxu1 %v2209_v48  ;;  %v609_v47 = vld [vmem:[%s3500_s4 + $0x8f8] sm:$0xff]  ;;  %v2227_v48 = vpack.c.bf16 %v619_v41, %v618_v38 }
 0x169   :  { %2186 = vmatprep.subr.bf16.mxu0 %v2185_v52  ;;  %v620_v52 = vld [vmem:[%s3500_s4 + $0x950] sm:$0xff]  ;;  %v2205_v56 = vpack.c.bf16 %v609_v47, %v608_v46 }
 0x16a   :  { %1220 = vmatmul.mubr.f32.vlgmr.msra.gmra.mrb[34].mxu1 %v303_v59  ;;  %v2207_v59 = vpack.c.bf16 %v593_v58, %v592_v50 }
 0x16b   :  { %2212 = vmatpush3.bf16.msra.mxu1 %v2211_v42  ;;  %1359 = vmatprep.mubr.f32.mxu1 %v318_v7  ;;  %v2231_v42 = vpack.c.bf16 %v621_v54, %v620_v52  ;;  %v640_v7 = vld [vmem:[%s3500_s4 + $0x9f0] sm:$0xff] }
 0x16c   :  { %2188 = vmatpush3.bf16.msra.mxu0 %v2187_v2  ;;  %2214 = vmatprep.subr.bf16.mxu1 %v2213_v3  ;;  %v2233_v2 = vpack.c.bf16 %v639_v63, %v638_v62  ;;  %v622_v3 = vld [vmem:[%s3500_s4 + $0x960] sm:$0xff] }
 0x16d   :  { %2190 = vmatprep.subr.bf16.mxu0 %v2189_v9  ;;  %v641_v9 = vld [vmem:[%s3500_s4 + $0x9f8] sm:$0xff]  ;;  %v2235_v39 = vpack.c.bf16 %v623_v4, %v622_v3 }
 0x16e   :  { %v2237_v12 = vpack.c.bf16 %v641_v9, %v640_v7 }
 0x16f   :  { %2216 = vmatpush3.bf16.msra.mxu1 %v2215_v14  ;;  %v309_v14 = vmax.f32 %v2702_v16, 0.0  ;;  %v646_v16 = vld [vmem:[%s3500_s4 + $0xa20] sm:$0xff] }
 0x170   :  { %2192 = vmatpush3.bf16.msra.mxu0 %v2191_v15  ;;  %2218 = vmatprep.subr.bf16.mxu1 %v2217_v8  ;;  %v2270_v15 = vmov 0.0|0.0   ;;  %v644_v8 = vld [vmem:[%s3500_s4 + $0xa10] sm:$0xff] }
 0x171   :  { %2194 = vmatprep.subr.bf16.mxu0 %v2193_v21  ;;  %v2245_v20 = vpack.c.bf16 %v645_v17, %v644_v8  ;;  %v647_v21 = vld [vmem:[%s3500_s4 + $0xa28] sm:$0xff] }
 0x172   :  { %v2248_v25 = vpack.c.bf16 %v647_v21, %v646_v16 }
 0x173   :  { %2220 = vmatpush3.bf16.msra.mxu1 %v2219_v19 }
 0x174   :  { %2196 = vmatpush3.bf16.msra.mxu0 %v2195_v27  ;;  %2222 = vmatprep.subr.bf16.mxu1 %v2221_v28  ;;  %v652_v27 = vld [vmem:[%s3500_s4 + $0xa50] sm:$0xff]  ;;  %v653_v28 = vld [vmem:[%s3500_s4 + $0xa58] sm:$0xff] }
 0x175   :  { %2198 = vmatprep.subr.bf16.mxu0 %v2197_v31  ;;  %v2257_v60 = vpack.c.bf16 %v653_v28, %v652_v27  ;;  %v2260_v31 = vpack.c.bf16 %v655_v30, %v654_v29 }
 0x177   :  { %2224 = vmatpush3.bf16.msra.mxu1 %v2223_v34 }
 0x178   :  { %2200 = vmatpush3.bf16.msra.mxu0 %v2199_v35  ;;  %2226 = vmatprep.subr.bf16.mxu1 %v2225_v36  ;;  %v1456_v36 = vld [vmem:[%s3502_s5] ss:$0 sm:$0xff] }
 0x179   :  { %2202 = vmatprep.subr.bf16.mxu0 %v2201_v44 }
 0x17b   :  { %2228 = vmatpush3.bf16.msra.mxu1 %v2227_v48 }
 0x17c   :  { %2204 = vmatpush3.bf16.msra.mxu0 %v2203_v10  ;;  %2230 = vmatprep.subr.bf16.mxu1 %v2229_v57 }
 0x17d   :  { %2206 = vmatprep.subr.bf16.mxu0 %v2205_v56 }
 0x17f   :  { %2232 = vmatpush3.bf16.msra.mxu1 %v2231_v42 }
 0x180   :  { %2208 = vmatpush3.bf16.msra.mxu0 %v2207_v59  ;;  %2234 = vmatprep.subr.bf16.mxu1 %v2233_v2 }
 0x181   :  { %2241 = vmatprep.subr.bf16.mxu0 %v2270_v15 }
 0x183   :  { %1290 = vmatmul.mubr.f32.vlgmr.msra.gmra.mrb[8].mxu0 %v309_v14  ;;  %2236 = vmatpush3.bf16.msra.mxu1 %v2235_v39 }
 0x184   :  { %2243 = vmatpush3.bf16.msra.mxu0 %v2242_v11  ;;  %2238 = vmatprep.subr.bf16.mxu1 %v2237_v12 }
 0x185   :  { %2244 = vmatprep.subr.bf16.mxu0 %v2270_v15  ;;  %1918 = vmatprep.mubr.msk.f32.mxu0 %vm2269_vm1, %v2268_v0  ;;  %v650_v0 = vld [vmem:[%s3500_s4 + $0xa40] sm:$0xff] }
 0x186   :  { %v2254_v19 = vpack.c.bf16 %v651_v24, %v650_v0 }
 0x187   :  { %2240 = vmatpush3.bf16.msra.mxu1 %v2239_v18 }
 0x188   :  { %2246 = vmatpush3.bf16.msra.mxu0 %v2245_v20 }
 0x189   :  { %2247 = vmatprep.subr.bf16.mxu0 %v2270_v15 }
 0x18a   :  { %1360 = vmatmul.mubr.f32.vlgmr.msra.gmra.mrb[36].mxu1 %v315_v22 }
 0x18c   :  { %2249 = vmatpush3.bf16.msra.mxu0 %v2248_v25 }
 0x18d   :  { %2250 = vmatprep.subr.bf16.mxu0 %v2270_v15 }
 0x190   :  { %2252 = vmatpush3.bf16.msra.mxu0 %v2251_v53 }
 0x191   :  { %2253 = vmatprep.subr.bf16.mxu0 %v2270_v15 }
 0x194   :  { %2255 = vmatpush3.bf16.msra.mxu0 %v2254_v19 }
 0x195   :  { %2256 = vmatprep.subr.bf16.mxu0 %v2270_v15 }
 0x198   :  { %2258 = vmatpush3.bf16.msra.mxu0 %v2257_v60 }
 0x199   :  { %2259 = vmatprep.subr.bf16.mxu0 %v2270_v15 }
 0x19c   :  { %2261 = vmatpush3.bf16.msra.mxu0 %v2260_v31 }
 0x19d   :  { %2262 = vmatprep.subr.bf16.mxu0 %v2270_v15 }
 0x1a0   :  { %2264 = vmatpush3.bf16.msra.mxu0 %v2263_v51 }
 0x1a3   :  { %1919 = vmatmul.mubr.f32.vlgmr.msra.gmra.mrb[10].mxu0 %v321_v55 }
 0x1d5   :  { %v1505_v33 = vpop.f32.mrb[0].mxu0 }
 0x1d6   :  { %v1506_v34 = vpop.f32.mrb[1].mxu0 }
 0x1d7   :  { %v1507_v35 = vadd.f32 %v1506_v34, %v1505_v33 }
 0x1d9   :  { %v732_v41 = vadd.f32 %v1507_v35, %v1456_v36 }
 0x1dd   :  { %v1540_v37 = vpop.f32.mrb[28].mxu1 }
 0x1de   :  { %v1541_v38 = vpop.f32.mrb[29].mxu1 }
 0x1df   :  { %v1542_v44 = vadd.f32 %v1541_v38, %v1540_v37 }
 0x1e1   :  { %v802_v61 = vadd.f32 %v1542_v44, %v732_v41 }
 0x1f6   :  { %v1575_v43 = vpop.f32.mrb[2].mxu0 }
 0x1f7   :  { %v1576_v45 = vpop.f32.mrb[3].mxu0 }
 0x1f8   :  { %v1577_v46 = vadd.f32 %v1576_v45, %v1575_v43 }
 0x1fa   :  { %v872_v47 = vadd.f32 %v1577_v46, %v802_v61 }
 0x1fd   :  { %v1610_v48 = vpop.f32.mrb[30].mxu1 }
 0x1fe   :  { %v1611_v10 = vpop.f32.mrb[31].mxu1 }
 0x1ff   :  { %v1612_v1 = vadd.f32 %v1611_v10, %v1610_v48 }
 0x201   :  { %v942_v57 = vadd.f32 %v1612_v1, %v872_v47 }
 0x216   :  { %v1645_v50 = vpop.f32.mrb[4].mxu0 }
 0x217   :  { %v1646_v52 = vpop.f32.mrb[5].mxu0 }
 0x218   :  { %v1647_v54 = vadd.f32 %v1646_v52, %v1645_v50 }
 0x21a   :  { %v1012_v56 = vadd.f32 %v1647_v54, %v942_v57 }
 0x21d   :  { %v1680_v58 = vpop.f32.mrb[32].mxu1 }
 0x21e   :  { %v1681_v62 = vpop.f32.mrb[33].mxu1 }
 0x21f   :  { %v1682_v63 = vadd.f32 %v1681_v62, %v1680_v58 }
 0x221   :  { %v1082_v42 = vadd.f32 %v1682_v63, %v1012_v56 }
 0x236   :  { %v1715_v59 = vpop.f32.mrb[6].mxu0 }
 0x237   :  { %v1716_v2 = vpop.f32.mrb[7].mxu0 }
 0x238   :  { %v1717_v3 = vadd.f32 %v1716_v2, %v1715_v59 }
 0x23a   :  { %v1152_v4 = vadd.f32 %v1717_v3, %v1082_v42 }
 0x23d   :  { %v1750_v6 = vpop.f32.mrb[34].mxu1 }
 0x23e   :  { %v1751_v23 = vpop.f32.mrb[35].mxu1 }
 0x23f   :  { %v1752_v7 = vadd.f32 %v1751_v23, %v1750_v6 }
 0x241   :  { %v1222_v9 = vadd.f32 %v1752_v7, %v1152_v4 }
 0x256   :  { %v1785_v39 = vpop.f32.mrb[8].mxu0 }
 0x257   :  { %v1786_v11 = vpop.f32.mrb[9].mxu0 }
 0x258   :  { %v1787_v12 = vadd.f32 %v1786_v11, %v1785_v39 }
 0x25a   :  { %v1292_v13 = vadd.f32 %v1787_v12, %v1222_v9 }
 0x25d   :  { %v1820_v40 = vpop.f32.mrb[36].mxu1 }
 0x25e   :  { %v1821_v14 = vpop.f32.mrb[37].mxu1 }
 0x25f   :  { %v1822_v15 = vadd.f32 %v1821_v14, %v1820_v40 }
 0x261   :  { %v1362_v8 = vadd.f32 %v1822_v15, %v1292_v13 }
 0x276   :  { %v1431_v17 = vpop.f32.mrb[10].mxu0 }
 0x277   :  { %v1432_v18 = vadd.f32 %v1431_v17, %v1362_v8  ;;  %v1920_v20 = vpop.f32.mrb[11].mxu0 }
 0x279   :  { %v1435_v16 = vmax.f32 %v1432_v18, 0.0 }
 0x27b   :  { %1436 = vst [vmem:[%s3503_s6] sm:$0xff] %v1435_v16 }

</bundles_post_ra>
